<compile_context>
chip_gen: v7x
topology: tpu7x:2x2x1
jax: 0.10.0
libtpu: 0.0.40
codegen_flags: <defaults>
</compile_context>

<pallas_src>
import functools

import numpy as np

import jax
import jax.numpy as jnp
from jax.experimental import pallas as pl
from jax.experimental.pallas import tpu as pltpu


def _double_conv_kernel(x_ref, w1_ref, f1_ref, g1_ref, b1_ref,
                        w2_ref, f2_ref, g2_ref, b2_ref,
                        o_ref, pad1_ref, pad2_ref,
                        *, N, H, W, Cin, Cmid, Cout, eps):
    """Fused DoubleConv on lane-dense 2-D slabs.

    x_ref:    (N*H, W*Cin)              lane-dense input rows
    w1_ref:   (3, W*Cin,  W*Cmid)       banded conv1 weights (one per ky)
    f1_ref:   (W*Cmid, W*Cmid)          per-channel fold/broadcast matrix (BN1)
    g1/b1:    (1, W*Cmid)               BN1 gamma/beta, tiled lane-dense
    w2_ref:   (3, W*Cmid, W*Cout)       banded conv2 weights
    f2_ref:   (W*Cout, W*Cout)          fold/broadcast matrix (BN2)
    g2/b2:    (1, W*Cout)               BN2 gamma/beta, tiled lane-dense
    o_ref:    (N*H, W*Cout)             lane-dense output
    pad1_ref: (N*(H+2), W*Cin)          VMEM scratch: row-padded stage-1 input
    pad2_ref: (N*(H+2), W*Cmid)         VMEM scratch: row-padded stage-1 output
    """
    m_total = float(N * H * W)

    def conv3x3(rows, pad_ref, w_ref, lanes_in):
        # Row-padded slab: halo-only zeroing (2 rows per image, full width) and
        # a single full-width interior store per image.  Horizontal padding is
        # already folded into the banded weights, so no column halo exists.
        zero_row = jnp.zeros((1, lanes_in), jnp.float32)
        for n in range(N):
            base = n * (H + 2)
            pad_ref[base:base + 1, :] = zero_row
            pad_ref[base + H + 1:base + H + 2, :] = zero_row
            pad_ref[base + 1:base + 1 + H, :] = rows[n * H:(n + 1) * H, :]
        slab = pad_ref[...]                                   # (N*(H+2), lanes_in)

        # One MXU matmul per vertical tap ky; the banded weight handles the
        # 3 horizontal taps + left/right zero padding.
        full = [jnp.dot(slab, w_ref[ky], preferred_element_type=jnp.float32)
                for ky in range(3)]                           # (N*(H+2), lanes_out)

        # Vertical accumulation = shifted-row adds (full lane width).
        blocks = []
        for n in range(N):
            base = n * (H + 2)
            blocks.append(full[0][base:base + H, :]
                          + full[1][base + 1:base + 1 + H, :]
                          + full[2][base + 2:base + 2 + H, :])
        return jnp.concatenate(blocks, axis=0)                # (N*H, lanes_out)

    def bn_relu(acc, fold_ref, g_ref, b_ref):
        # Training-mode BatchNorm2d, one-pass stats in f32.
        rsum = jnp.sum(acc, axis=0, keepdims=True)            # (1, W*C)
        rsq = jnp.sum(acc * acc, axis=0, keepdims=True)       # (1, W*C)
        # Fold across the W lane-groups and broadcast back per channel.
        mean = jnp.dot(rsum, fold_ref[...],
                       preferred_element_type=jnp.float32) / m_total
        ex2 = jnp.dot(rsq, fold_ref[...],
                      preferred_element_type=jnp.float32) / m_total
        var = ex2 - mean * mean
        scale = g_ref[...] * jax.lax.rsqrt(var + eps)
        shift = b_ref[...] - mean * scale
        return jnp.maximum(acc * scale + shift, 0.0)

    # ---- Stage 1 ----
    y1 = bn_relu(conv3x3(x_ref[...], pad1_ref, w1_ref, W * Cin),
                 f1_ref, g1_ref, b1_ref)                      # (N*H, W*Cmid)
    # ---- Stage 2: intermediate stays lane-dense in VMEM ----
    y2 = bn_relu(conv3x3(y1, pad2_ref, w2_ref, W * Cmid),
                 f2_ref, g2_ref, b2_ref)                      # (N*H, W*Cout)

    o_ref[...] = y2.astype(o_ref.dtype)


def _banded_conv_weights(w_oihw, W):
    """OIHW 3x3 conv weight -> (3, W*Cin, W*Cout) banded matrices (per ky).

    Wbig[ky][xp*Cin+ci, w*Cout+co] = w[co, ci, ky, xp-w+1] for xp-w+1 in {0,1,2},
    else 0 — so a matmul of a lane-dense row (W*Cin) against Wbig[ky] performs
    the 3 horizontal taps including SAME zero padding.
    """
    Co, Ci = int(w_oihw.shape[0]), int(w_oihw.shape[1])
    w_hwio = jnp.transpose(w_oihw, (2, 3, 1, 0)).astype(jnp.float32)  # (ky,kx,Ci,Co)
    sel = np.zeros((3, W, W), np.float32)           # sel[kx, xp, w] = [xp == w+kx-1]
    for kx in range(3):
        for w in range(W):
            xp = w + kx - 1
            if 0 <= xp < W:
                sel[kx, xp, w] = 1.0
    wbig = jnp.einsum("kpw,ykio->ypiwo", jnp.asarray(sel), w_hwio)
    return wbig.reshape(3, W * Ci, W * Co)


def double_conv(x_nchw, params, eps=1e-5):
    """DoubleConv forward. x_nchw: (N, Cin, H, W); returns (N, Cout, H, W)."""
    N, Cin, H, W = x_nchw.shape
    Cmid = params["w1"].shape[0]
    Cout = params["w2"].shape[0]

    # Lane-dense input rows (free reshape after the NHWC transpose).
    x_rows = jnp.transpose(x_nchw, (0, 2, 3, 1)).reshape(
        N * H, W * Cin).astype(jnp.float32)

    w1 = _banded_conv_weights(params["w1"], W)                 # (3, W*Cin,  W*Cmid)
    w2 = _banded_conv_weights(params["w2"], W)                 # (3, W*Cmid, W*Cout)
    # Per-channel fold + broadcast across the W lane-groups: tile(eye(C),(W,W)).
    f1 = jnp.tile(jnp.eye(Cmid, dtype=jnp.float32), (W, W))    # (W*Cmid, W*Cmid)
    f2 = jnp.tile(jnp.eye(Cout, dtype=jnp.float32), (W, W))    # (W*Cout, W*Cout)
    # Gamma/beta pre-tiled lane-dense.
    g1 = jnp.tile(params["gamma1"].reshape(1, Cmid), (1, W)).astype(jnp.float32)
    b1 = jnp.tile(params["beta1"].reshape(1, Cmid), (1, W)).astype(jnp.float32)
    g2 = jnp.tile(params["gamma2"].reshape(1, Cout), (1, W)).astype(jnp.float32)
    b2 = jnp.tile(params["beta2"].reshape(1, Cout), (1, W)).astype(jnp.float32)

    kernel = functools.partial(_double_conv_kernel,
                               N=N, H=H, W=W, Cin=Cin, Cmid=Cmid, Cout=Cout,
                               eps=eps)

    out_rows = pl.pallas_call(
        kernel,
        out_shape=jax.ShapeDtypeStruct((N * H, W * Cout), jnp.float32),
        grid_spec=pltpu.PrefetchScalarGridSpec(
            num_scalar_prefetch=0,
            # Single program: training-mode BN needs full-batch stats and the
            # whole working set is a few hundred KB of VMEM at this size.
            grid=(1,),
            in_specs=[
                pl.BlockSpec((N * H, W * Cin), lambda i: (0, 0)),
                pl.BlockSpec((3, W * Cin, W * Cmid), lambda i: (0, 0, 0)),
                pl.BlockSpec((W * Cmid, W * Cmid), lambda i: (0, 0)),
                pl.BlockSpec((1, W * Cmid), lambda i: (0, 0)),
                pl.BlockSpec((1, W * Cmid), lambda i: (0, 0)),
                pl.BlockSpec((3, W * Cmid, W * Cout), lambda i: (0, 0, 0)),
                pl.BlockSpec((W * Cout, W * Cout), lambda i: (0, 0)),
                pl.BlockSpec((1, W * Cout), lambda i: (0, 0)),
                pl.BlockSpec((1, W * Cout), lambda i: (0, 0)),
            ],
            out_specs=pl.BlockSpec((N * H, W * Cout), lambda i: (0, 0)),
            scratch_shapes=[
                pltpu.VMEM((N * (H + 2), W * Cin), jnp.float32),
                pltpu.VMEM((N * (H + 2), W * Cmid), jnp.float32),
            ],
        ),
        compiler_params=pltpu.CompilerParams(
            dimension_semantics=("arbitrary",)),
    )(x_rows, w1, f1, g1, b1, w2, f2, g2, b2)

    y = out_rows.reshape(N, H, W, Cout)
    return jnp.transpose(y, (0, 3, 1, 2))                      # NHWC -> NCHW


# ----------------------------- pure-JAX reference -----------------------------
def _ref_stage(x_nhwc, w_oihw, gamma, beta, eps=1e-5):
    w_hwio = jnp.transpose(w_oihw, (2, 3, 1, 0))
    y = jax.lax.conv_general_dilated(
        x_nhwc, w_hwio, window_strides=(1, 1), padding="SAME",
        dimension_numbers=("NHWC", "HWIO", "NHWC"))
    mean = jnp.mean(y, axis=(0, 1, 2))
    var = jnp.mean((y - mean) ** 2, axis=(0, 1, 2))
    y = (y - mean) / jnp.sqrt(var + eps) * gamma + beta
    return jnp.maximum(y, 0.0)


def _ref_double_conv(x_nchw, params):
    x = jnp.transpose(x_nchw, (0, 2, 3, 1))
    y = _ref_stage(x, params["w1"], params["gamma1"], params["beta1"])
    y = _ref_stage(y, params["w2"], params["gamma2"], params["beta2"])
    return jnp.transpose(y, (0, 3, 1, 2))


if __name__ == "__main__":
    # DoubleConv(in_channels=4, out_channels=8) -> mid_channels=8
    N, Cin, H, W = 2, 4, 16, 16
    Cmid, Cout = 8, 8

    key = jax.random.PRNGKey(0)
    k_x, k_w1, k_w2, k_g1, k_b1, k_g2, k_b2 = jax.random.split(key, 7)

    x = jax.random.normal(k_x, (N, Cin, H, W), dtype=jnp.float32)
    params = {
        "w1": 0.1 * jax.random.normal(k_w1, (Cmid, Cin, 3, 3), dtype=jnp.float32),
        "gamma1": 1.0 + 0.1 * jax.random.normal(k_g1, (Cmid,), dtype=jnp.float32),
        "beta1": 0.1 * jax.random.normal(k_b1, (Cmid,), dtype=jnp.float32),
        "w2": 0.1 * jax.random.normal(k_w2, (Cout, Cmid, 3, 3), dtype=jnp.float32),
        "gamma2": 1.0 + 0.1 * jax.random.normal(k_g2, (Cout,), dtype=jnp.float32),
        "beta2": 0.1 * jax.random.normal(k_b2, (Cout,), dtype=jnp.float32),
    }

    out = jax.block_until_ready(double_conv(x, params))
    ref = jax.block_until_ready(_ref_double_conv(x, params))

    assert out.shape == (N, Cout, H, W)
    assert jnp.allclose(out, ref, atol=1e-4, rtol=1e-4), "mismatch vs reference"
    print("KERNEL_OK")
</pallas_src>

<mosaic_0001>
module attributes {stable_mosaic.version = 11 : i64} {
  func.func @_double_conv_kernel(%arg0: i32, %arg1: memref<32x64xf32, #tpu.memory_space<vmem>>, %arg2: memref<3x64x128xf32, #tpu.memory_space<vmem>>, %arg3: memref<128x128xf32, #tpu.memory_space<vmem>>, %arg4: memref<1x128xf32, #tpu.memory_space<vmem>>, %arg5: memref<1x128xf32, #tpu.memory_space<vmem>>, %arg6: memref<3x128x128xf32, #tpu.memory_space<vmem>>, %arg7: memref<128x128xf32, #tpu.memory_space<vmem>>, %arg8: memref<1x128xf32, #tpu.memory_space<vmem>>, %arg9: memref<1x128xf32, #tpu.memory_space<vmem>>, %arg10: memref<32x128xf32, #tpu.memory_space<vmem>>, %arg11: memref<36x64xf32, #tpu.memory_space<vmem>>, %arg12: memref<36x128xf32, #tpu.memory_space<vmem>>) attributes {dimension_semantics = [#tpu.dimension_semantics<arbitrary>], iteration_bounds = array<i64: 1>, scalar_prefetch = 0 : i64, scratch_operands = 2 : i64, tpu.core_type = #tpu.core_type<tc>, window_params = [{pipeline_mode = #tpu.pipeline_mode<synchronous>, transform_indices = @transform_0, window_bounds = array<i64: 32, 64>}, {pipeline_mode = #tpu.pipeline_mode<synchronous>, transform_indices = @transform_1, window_bounds = array<i64: 3, 64, 128>}, {pipeline_mode = #tpu.pipeline_mode<synchronous>, transform_indices = @transform_2, window_bounds = array<i64: 128, 128>}, {pipeline_mode = #tpu.pipeline_mode<synchronous>, transform_indices = @transform_3, window_bounds = array<i64: 1, 128>}, {pipeline_mode = #tpu.pipeline_mode<synchronous>, transform_indices = @transform_4, window_bounds = array<i64: 1, 128>}, {pipeline_mode = #tpu.pipeline_mode<synchronous>, transform_indices = @transform_5, window_bounds = array<i64: 3, 128, 128>}, {pipeline_mode = #tpu.pipeline_mode<synchronous>, transform_indices = @transform_6, window_bounds = array<i64: 128, 128>}, {pipeline_mode = #tpu.pipeline_mode<synchronous>, transform_indices = @transform_7, window_bounds = array<i64: 1, 128>}, {pipeline_mode = #tpu.pipeline_mode<synchronous>, transform_indices = @transform_8, window_bounds = array<i64: 1, 128>}, {pipeline_mode = #tpu.pipeline_mode<synchronous>, transform_indices = @transform_9, window_bounds = array<i64: 32, 128>}]} {
    %c0 = arith.constant 0 : index
    %c0_0 = arith.constant 0 : index
    %0 = vector.load %arg1[%c0, %c0_0] : memref<32x64xf32, #tpu.memory_space<vmem>>, vector<32x64xf32>
    %cst = arith.constant 0.000000e+00 : f32
    %1 = vector.broadcast %cst : f32 to vector<1x64xf32>
    %c0_1 = arith.constant 0 : index
    %c0_2 = arith.constant 0 : index
    %2 = vector.load %arg11[%c0_1, %c0_2] : memref<36x64xf32, #tpu.memory_space<vmem>>, vector<1x64xf32>
    tpu.vector_store %arg11[%c0_1, %c0_2], %1 {strides = array<i32>} : memref<36x64xf32, #tpu.memory_space<vmem>>, vector<1x64xf32>,
    %c17 = arith.constant 17 : index
    %c0_3 = arith.constant 0 : index
    %3 = vector.load %arg11[%c17, %c0_3] : memref<36x64xf32, #tpu.memory_space<vmem>>, vector<1x64xf32>
    tpu.vector_store %arg11[%c17, %c0_3], %1 {strides = array<i32>} : memref<36x64xf32, #tpu.memory_space<vmem>>, vector<1x64xf32>,
    %4 = vector.extract_strided_slice %0 {offsets = [0, 0], sizes = [16, 64], strides = [1, 1]} : vector<32x64xf32> to vector<16x64xf32>
    %c1 = arith.constant 1 : index
    %c0_4 = arith.constant 0 : index
    %5 = vector.load %arg11[%c1, %c0_4] : memref<36x64xf32, #tpu.memory_space<vmem>>, vector<16x64xf32>
    tpu.vector_store %arg11[%c1, %c0_4], %4 {strides = array<i32>} : memref<36x64xf32, #tpu.memory_space<vmem>>, vector<16x64xf32>,
    %c18 = arith.constant 18 : index
    %c0_5 = arith.constant 0 : index
    %6 = vector.load %arg11[%c18, %c0_5] : memref<36x64xf32, #tpu.memory_space<vmem>>, vector<1x64xf32>
    tpu.vector_store %arg11[%c18, %c0_5], %1 {strides = array<i32>} : memref<36x64xf32, #tpu.memory_space<vmem>>, vector<1x64xf32>,
    %c35 = arith.constant 35 : index
    %c0_6 = arith.constant 0 : index
    %7 = vector.load %arg11[%c35, %c0_6] : memref<36x64xf32, #tpu.memory_space<vmem>>, vector<1x64xf32>
    tpu.vector_store %arg11[%c35, %c0_6], %1 {strides = array<i32>} : memref<36x64xf32, #tpu.memory_space<vmem>>, vector<1x64xf32>,
    %8 = vector.extract_strided_slice %0 {offsets = [16, 0], sizes = [16, 64], strides = [1, 1]} : vector<32x64xf32> to vector<16x64xf32>
    %c19 = arith.constant 19 : index
    %c0_7 = arith.constant 0 : index
    %9 = vector.load %arg11[%c19, %c0_7] : memref<36x64xf32, #tpu.memory_space<vmem>>, vector<16x64xf32>
    tpu.vector_store %arg11[%c19, %c0_7], %8 {strides = array<i32>} : memref<36x64xf32, #tpu.memory_space<vmem>>, vector<16x64xf32>,
    %c0_8 = arith.constant 0 : index
    %c0_9 = arith.constant 0 : index
    %10 = vector.load %arg11[%c0_8, %c0_9] : memref<36x64xf32, #tpu.memory_space<vmem>>, vector<36x64xf32>
    %c0_10 = arith.constant 0 : index
    %c0_11 = arith.constant 0 : index
    %c0_12 = arith.constant 0 : index
    %11 = vector.load %arg2[%c0_10, %c0_11, %c0_12] : memref<3x64x128xf32, #tpu.memory_space<vmem>>, vector<1x64x128xf32>
    %12 = vector.shape_cast %11 : vector<1x64x128xf32> to vector<64x128xf32>
    %cst_13 = arith.constant dense<0.000000e+00> : vector<36x128xf32>
    %13 = tpu.matmul %10, %12, %cst_13 {dimension_numbers = #tpu.dot_dimension_numbers<[1], [0], [0], [1], [0, 0, 1, 1], [], []>} : vector<36x64xf32>, vector<64x128xf32>, vector<36x128xf32> -> vector<36x128xf32>
    %c1_14 = arith.constant 1 : index
    %c0_15 = arith.constant 0 : index
    %c0_16 = arith.constant 0 : index
    %14 = vector.load %arg2[%c1_14, %c0_15, %c0_16] : memref<3x64x128xf32, #tpu.memory_space<vmem>>, vector<1x64x128xf32>
    %15 = vector.shape_cast %14 : vector<1x64x128xf32> to vector<64x128xf32>
    %cst_17 = arith.constant dense<0.000000e+00> : vector<36x128xf32>
    %16 = tpu.matmul %10, %15, %cst_17 {dimension_numbers = #tpu.dot_dimension_numbers<[1], [0], [0], [1], [0, 0, 1, 1], [], []>} : vector<36x64xf32>, vector<64x128xf32>, vector<36x128xf32> -> vector<36x128xf32>
    %c2 = arith.constant 2 : index
    %c0_18 = arith.constant 0 : index
    %c0_19 = arith.constant 0 : index
    %17 = vector.load %arg2[%c2, %c0_18, %c0_19] : memref<3x64x128xf32, #tpu.memory_space<vmem>>, vector<1x64x128xf32>
    %18 = vector.shape_cast %17 : vector<1x64x128xf32> to vector<64x128xf32>
    %cst_20 = arith.constant dense<0.000000e+00> : vector<36x128xf32>
    %19 = tpu.matmul %10, %18, %cst_20 {dimension_numbers = #tpu.dot_dimension_numbers<[1], [0], [0], [1], [0, 0, 1, 1], [], []>} : vector<36x64xf32>, vector<64x128xf32>, vector<36x128xf32> -> vector<36x128xf32>
    %20 = vector.extract_strided_slice %13 {offsets = [0, 0], sizes = [16, 128], strides = [1, 1]} : vector<36x128xf32> to vector<16x128xf32>
    %21 = vector.extract_strided_slice %16 {offsets = [1, 0], sizes = [16, 128], strides = [1, 1]} : vector<36x128xf32> to vector<16x128xf32>
    %22 = arith.addf %20, %21 : vector<16x128xf32>
    %23 = vector.extract_strided_slice %19 {offsets = [2, 0], sizes = [16, 128], strides = [1, 1]} : vector<36x128xf32> to vector<16x128xf32>
    %24 = arith.addf %22, %23 : vector<16x128xf32>
    %25 = vector.extract_strided_slice %13 {offsets = [18, 0], sizes = [16, 128], strides = [1, 1]} : vector<36x128xf32> to vector<16x128xf32>
    %26 = vector.extract_strided_slice %16 {offsets = [19, 0], sizes = [16, 128], strides = [1, 1]} : vector<36x128xf32> to vector<16x128xf32>
    %27 = arith.addf %25, %26 : vector<16x128xf32>
    %28 = vector.extract_strided_slice %19 {offsets = [20, 0], sizes = [16, 128], strides = [1, 1]} : vector<36x128xf32> to vector<16x128xf32>
    %29 = arith.addf %27, %28 : vector<16x128xf32>
    %30 = tpu.concatenate %24, %29 in 0 : vector<16x128xf32>, vector<16x128xf32> -> vector<32x128xf32>
    %cst_21 = arith.constant dense<0.000000e+00> : vector<128xf32>
    %31 = vector.multi_reduction <add>, %30, %cst_21 [0] : vector<32x128xf32> to vector<128xf32>
    %32 = vector.shape_cast %31 : vector<128xf32> to vector<1x128xf32>
    %33 = arith.mulf %30, %30 : vector<32x128xf32>
    %cst_22 = arith.constant dense<0.000000e+00> : vector<128xf32>
    %34 = vector.multi_reduction <add>, %33, %cst_22 [0] : vector<32x128xf32> to vector<128xf32>
    %35 = vector.shape_cast %34 : vector<128xf32> to vector<1x128xf32>
    %c0_23 = arith.constant 0 : index
    %c0_24 = arith.constant 0 : index
    %36 = vector.load %arg3[%c0_23, %c0_24] : memref<128x128xf32, #tpu.memory_space<vmem>>, vector<128x128xf32>
    %cst_25 = arith.constant dense<0.000000e+00> : vector<1x128xf32>
    %37 = tpu.matmul %32, %36, %cst_25 {dimension_numbers = #tpu.dot_dimension_numbers<[1], [0], [0], [1], [0, 0, 1, 1], [], []>} : vector<1x128xf32>, vector<128x128xf32>, vector<1x128xf32> -> vector<1x128xf32>
    %cst_26 = arith.constant 5.120000e+02 : f32
    %38 = vector.broadcast %cst_26 : f32 to vector<1x128xf32>
    %39 = arith.divf %37, %38 : vector<1x128xf32>
    %c0_27 = arith.constant 0 : index
    %c0_28 = arith.constant 0 : index
    %40 = vector.load %arg3[%c0_27, %c0_28] : memref<128x128xf32, #tpu.memory_space<vmem>>, vector<128x128xf32>
    %cst_29 = arith.constant dense<0.000000e+00> : vector<1x128xf32>
    %41 = tpu.matmul %35, %40, %cst_29 {dimension_numbers = #tpu.dot_dimension_numbers<[1], [0], [0], [1], [0, 0, 1, 1], [], []>} : vector<1x128xf32>, vector<128x128xf32>, vector<1x128xf32> -> vector<1x128xf32>
    %cst_30 = arith.constant 5.120000e+02 : f32
    %42 = vector.broadcast %cst_30 : f32 to vector<1x128xf32>
    %43 = arith.divf %41, %42 : vector<1x128xf32>
    %44 = arith.mulf %39, %39 : vector<1x128xf32>
    %45 = arith.subf %43, %44 : vector<1x128xf32>
    %c0_31 = arith.constant 0 : index
    %c0_32 = arith.constant 0 : index
    %46 = vector.load %arg4[%c0_31, %c0_32] : memref<1x128xf32, #tpu.memory_space<vmem>>, vector<1x128xf32>
    %cst_33 = arith.constant 9.99999974E-6 : f32
    %47 = vector.broadcast %cst_33 : f32 to vector<1x128xf32>
    %48 = arith.addf %45, %47 : vector<1x128xf32>
    %49 = math.rsqrt %48 : vector<1x128xf32>
    %50 = arith.mulf %46, %49 : vector<1x128xf32>
    %c0_34 = arith.constant 0 : index
    %c0_35 = arith.constant 0 : index
    %51 = vector.load %arg5[%c0_34, %c0_35] : memref<1x128xf32, #tpu.memory_space<vmem>>, vector<1x128xf32>
    %52 = arith.mulf %39, %50 : vector<1x128xf32>
    %53 = arith.subf %51, %52 : vector<1x128xf32>
    %54 = vector.broadcast %50 : vector<1x128xf32> to vector<32x128xf32>
    %55 = arith.mulf %30, %54 : vector<32x128xf32>
    %56 = vector.broadcast %53 : vector<1x128xf32> to vector<32x128xf32>
    %57 = arith.addf %55, %56 : vector<32x128xf32>
    %cst_36 = arith.constant 0.000000e+00 : f32
    %58 = vector.broadcast %cst_36 : f32 to vector<32x128xf32>
    %59 = arith.maximumf %57, %58 : vector<32x128xf32>
    %cst_37 = arith.constant 0.000000e+00 : f32
    %60 = vector.broadcast %cst_37 : f32 to vector<1x128xf32>
    %c0_38 = arith.constant 0 : index
    %c0_39 = arith.constant 0 : index
    %61 = vector.load %arg12[%c0_38, %c0_39] : memref<36x128xf32, #tpu.memory_space<vmem>>, vector<1x128xf32>
    tpu.vector_store %arg12[%c0_38, %c0_39], %60 {strides = array<i32>} : memref<36x128xf32, #tpu.memory_space<vmem>>, vector<1x128xf32>,
    %c17_40 = arith.constant 17 : index
    %c0_41 = arith.constant 0 : index
    %62 = vector.load %arg12[%c17_40, %c0_41] : memref<36x128xf32, #tpu.memory_space<vmem>>, vector<1x128xf32>
    tpu.vector_store %arg12[%c17_40, %c0_41], %60 {strides = array<i32>} : memref<36x128xf32, #tpu.memory_space<vmem>>, vector<1x128xf32>,
    %63 = vector.extract_strided_slice %59 {offsets = [0, 0], sizes = [16, 128], strides = [1, 1]} : vector<32x128xf32> to vector<16x128xf32>
    %c1_42 = arith.constant 1 : index
    %c0_43 = arith.constant 0 : index
    %64 = vector.load %arg12[%c1_42, %c0_43] : memref<36x128xf32, #tpu.memory_space<vmem>>, vector<16x128xf32>
    tpu.vector_store %arg12[%c1_42, %c0_43], %63 {strides = array<i32>} : memref<36x128xf32, #tpu.memory_space<vmem>>, vector<16x128xf32>,
    %c18_44 = arith.constant 18 : index
    %c0_45 = arith.constant 0 : index
    %65 = vector.load %arg12[%c18_44, %c0_45] : memref<36x128xf32, #tpu.memory_space<vmem>>, vector<1x128xf32>
    tpu.vector_store %arg12[%c18_44, %c0_45], %60 {strides = array<i32>} : memref<36x128xf32, #tpu.memory_space<vmem>>, vector<1x128xf32>,
    %c35_46 = arith.constant 35 : index
    %c0_47 = arith.constant 0 : index
    %66 = vector.load %arg12[%c35_46, %c0_47] : memref<36x128xf32, #tpu.memory_space<vmem>>, vector<1x128xf32>
    tpu.vector_store %arg12[%c35_46, %c0_47], %60 {strides = array<i32>} : memref<36x128xf32, #tpu.memory_space<vmem>>, vector<1x128xf32>,
    %67 = vector.extract_strided_slice %59 {offsets = [16, 0], sizes = [16, 128], strides = [1, 1]} : vector<32x128xf32> to vector<16x128xf32>
    %c19_48 = arith.constant 19 : index
    %c0_49 = arith.constant 0 : index
    %68 = vector.load %arg12[%c19_48, %c0_49] : memref<36x128xf32, #tpu.memory_space<vmem>>, vector<16x128xf32>
    tpu.vector_store %arg12[%c19_48, %c0_49], %67 {strides = array<i32>} : memref<36x128xf32, #tpu.memory_space<vmem>>, vector<16x128xf32>,
    %c0_50 = arith.constant 0 : index
    %c0_51 = arith.constant 0 : index
    %69 = vector.load %arg12[%c0_50, %c0_51] : memref<36x128xf32, #tpu.memory_space<vmem>>, vector<36x128xf32>
    %c0_52 = arith.constant 0 : index
    %c0_53 = arith.constant 0 : index
    %c0_54 = arith.constant 0 : index
    %70 = vector.load %arg6[%c0_52, %c0_53, %c0_54] : memref<3x128x128xf32, #tpu.memory_space<vmem>>, vector<1x128x128xf32>
    %71 = vector.shape_cast %70 : vector<1x128x128xf32> to vector<128x128xf32>
    %cst_55 = arith.constant dense<0.000000e+00> : vector<36x128xf32>
    %72 = tpu.matmul %69, %71, %cst_55 {dimension_numbers = #tpu.dot_dimension_numbers<[1], [0], [0], [1], [0, 0, 1, 1], [], []>} : vector<36x128xf32>, vector<128x128xf32>, vector<36x128xf32> -> vector<36x128xf32>
    %c1_56 = arith.constant 1 : index
    %c0_57 = arith.constant 0 : index
    %c0_58 = arith.constant 0 : index
    %73 = vector.load %arg6[%c1_56, %c0_57, %c0_58] : memref<3x128x128xf32, #tpu.memory_space<vmem>>, vector<1x128x128xf32>
    %74 = vector.shape_cast %73 : vector<1x128x128xf32> to vector<128x128xf32>
    %cst_59 = arith.constant dense<0.000000e+00> : vector<36x128xf32>
    %75 = tpu.matmul %69, %74, %cst_59 {dimension_numbers = #tpu.dot_dimension_numbers<[1], [0], [0], [1], [0, 0, 1, 1], [], []>} : vector<36x128xf32>, vector<128x128xf32>, vector<36x128xf32> -> vector<36x128xf32>
    %c2_60 = arith.constant 2 : index
    %c0_61 = arith.constant 0 : index
    %c0_62 = arith.constant 0 : index
    %76 = vector.load %arg6[%c2_60, %c0_61, %c0_62] : memref<3x128x128xf32, #tpu.memory_space<vmem>>, vector<1x128x128xf32>
    %77 = vector.shape_cast %76 : vector<1x128x128xf32> to vector<128x128xf32>
    %cst_63 = arith.constant dense<0.000000e+00> : vector<36x128xf32>
    %78 = tpu.matmul %69, %77, %cst_63 {dimension_numbers = #tpu.dot_dimension_numbers<[1], [0], [0], [1], [0, 0, 1, 1], [], []>} : vector<36x128xf32>, vector<128x128xf32>, vector<36x128xf32> -> vector<36x128xf32>
    %79 = vector.extract_strided_slice %72 {offsets = [0, 0], sizes = [16, 128], strides = [1, 1]} : vector<36x128xf32> to vector<16x128xf32>
    %80 = vector.extract_strided_slice %75 {offsets = [1, 0], sizes = [16, 128], strides = [1, 1]} : vector<36x128xf32> to vector<16x128xf32>
    %81 = arith.addf %79, %80 : vector<16x128xf32>
    %82 = vector.extract_strided_slice %78 {offsets = [2, 0], sizes = [16, 128], strides = [1, 1]} : vector<36x128xf32> to vector<16x128xf32>
    %83 = arith.addf %81, %82 : vector<16x128xf32>
    %84 = vector.extract_strided_slice %72 {offsets = [18, 0], sizes = [16, 128], strides = [1, 1]} : vector<36x128xf32> to vector<16x128xf32>
    %85 = vector.extract_strided_slice %75 {offsets = [19, 0], sizes = [16, 128], strides = [1, 1]} : vector<36x128xf32> to vector<16x128xf32>
    %86 = arith.addf %84, %85 : vector<16x128xf32>
    %87 = vector.extract_strided_slice %78 {offsets = [20, 0], sizes = [16, 128], strides = [1, 1]} : vector<36x128xf32> to vector<16x128xf32>
    %88 = arith.addf %86, %87 : vector<16x128xf32>
    %89 = tpu.concatenate %83, %88 in 0 : vector<16x128xf32>, vector<16x128xf32> -> vector<32x128xf32>
    %cst_64 = arith.constant dense<0.000000e+00> : vector<128xf32>
    %90 = vector.multi_reduction <add>, %89, %cst_64 [0] : vector<32x128xf32> to vector<128xf32>
    %91 = vector.shape_cast %90 : vector<128xf32> to vector<1x128xf32>
    %92 = arith.mulf %89, %89 : vector<32x128xf32>
    %cst_65 = arith.constant dense<0.000000e+00> : vector<128xf32>
    %93 = vector.multi_reduction <add>, %92, %cst_65 [0] : vector<32x128xf32> to vector<128xf32>
    %94 = vector.shape_cast %93 : vector<128xf32> to vector<1x128xf32>
    %c0_66 = arith.constant 0 : index
    %c0_67 = arith.constant 0 : index
    %95 = vector.load %arg7[%c0_66, %c0_67] : memref<128x128xf32, #tpu.memory_space<vmem>>, vector<128x128xf32>
    %cst_68 = arith.constant dense<0.000000e+00> : vector<1x128xf32>
    %96 = tpu.matmul %91, %95, %cst_68 {dimension_numbers = #tpu.dot_dimension_numbers<[1], [0], [0], [1], [0, 0, 1, 1], [], []>} : vector<1x128xf32>, vector<128x128xf32>, vector<1x128xf32> -> vector<1x128xf32>
    %cst_69 = arith.constant 5.120000e+02 : f32
    %97 = vector.broadcast %cst_69 : f32 to vector<1x128xf32>
    %98 = arith.divf %96, %97 : vector<1x128xf32>
    %c0_70 = arith.constant 0 : index
    %c0_71 = arith.constant 0 : index
    %99 = vector.load %arg7[%c0_70, %c0_71] : memref<128x128xf32, #tpu.memory_space<vmem>>, vector<128x128xf32>
    %cst_72 = arith.constant dense<0.000000e+00> : vector<1x128xf32>
    %100 = tpu.matmul %94, %99, %cst_72 {dimension_numbers = #tpu.dot_dimension_numbers<[1], [0], [0], [1], [0, 0, 1, 1], [], []>} : vector<1x128xf32>, vector<128x128xf32>, vector<1x128xf32> -> vector<1x128xf32>
    %cst_73 = arith.constant 5.120000e+02 : f32
    %101 = vector.broadcast %cst_73 : f32 to vector<1x128xf32>
    %102 = arith.divf %100, %101 : vector<1x128xf32>
    %103 = arith.mulf %98, %98 : vector<1x128xf32>
    %104 = arith.subf %102, %103 : vector<1x128xf32>
    %c0_74 = arith.constant 0 : index
    %c0_75 = arith.constant 0 : index
    %105 = vector.load %arg8[%c0_74, %c0_75] : memref<1x128xf32, #tpu.memory_space<vmem>>, vector<1x128xf32>
    %cst_76 = arith.constant 9.99999974E-6 : f32
    %106 = vector.broadcast %cst_76 : f32 to vector<1x128xf32>
    %107 = arith.addf %104, %106 : vector<1x128xf32>
    %108 = math.rsqrt %107 : vector<1x128xf32>
    %109 = arith.mulf %105, %108 : vector<1x128xf32>
    %c0_77 = arith.constant 0 : index
    %c0_78 = arith.constant 0 : index
    %110 = vector.load %arg9[%c0_77, %c0_78] : memref<1x128xf32, #tpu.memory_space<vmem>>, vector<1x128xf32>
    %111 = arith.mulf %98, %109 : vector<1x128xf32>
    %112 = arith.subf %110, %111 : vector<1x128xf32>
    %113 = vector.broadcast %109 : vector<1x128xf32> to vector<32x128xf32>
    %114 = arith.mulf %89, %113 : vector<32x128xf32>
    %115 = vector.broadcast %112 : vector<1x128xf32> to vector<32x128xf32>
    %116 = arith.addf %114, %115 : vector<32x128xf32>
    %cst_79 = arith.constant 0.000000e+00 : f32
    %117 = vector.broadcast %cst_79 : f32 to vector<32x128xf32>
    %118 = arith.maximumf %116, %117 : vector<32x128xf32>
    %c0_80 = arith.constant 0 : index
    %c0_81 = arith.constant 0 : index
    %119 = vector.load %arg10[%c0_80, %c0_81] : memref<32x128xf32, #tpu.memory_space<vmem>>, vector<32x128xf32>
    tpu.vector_store %arg10[%c0_80, %c0_81], %118 {strides = array<i32>} : memref<32x128xf32, #tpu.memory_space<vmem>>, vector<32x128xf32>,
    return
  }
  func.func @transform_0(%arg0: i32) -> (i32, i32) {
    %c0_i32 = arith.constant 0 : i32
    %c0_i32_0 = arith.constant 0 : i32
    %c0_i32_1 = arith.constant 0 : i32
    return %c0_i32, %c0_i32_0 : i32, i32
  }
  func.func @transform_1(%arg0: i32) -> (i32, i32, i32) {
    %c0_i32 = arith.constant 0 : i32
    %c0_i32_0 = arith.constant 0 : i32
    %c0_i32_1 = arith.constant 0 : i32
    %c0_i32_2 = arith.constant 0 : i32
    return %c0_i32, %c0_i32_0, %c0_i32_1 : i32, i32, i32
  }
  func.func @transform_2(%arg0: i32) -> (i32, i32) {
    %c0_i32 = arith.constant 0 : i32
    %c0_i32_0 = arith.constant 0 : i32
    %c0_i32_1 = arith.constant 0 : i32
    return %c0_i32, %c0_i32_0 : i32, i32
  }
  func.func @transform_3(%arg0: i32) -> (i32, i32) {
    %c0_i32 = arith.constant 0 : i32
    %c0_i32_0 = arith.constant 0 : i32
    %c0_i32_1 = arith.constant 0 : i32
    return %c0_i32, %c0_i32_0 : i32, i32
  }
  func.func @transform_4(%arg0: i32) -> (i32, i32) {
    %c0_i32 = arith.constant 0 : i32
    %c0_i32_0 = arith.constant 0 : i32
    %c0_i32_1 = arith.constant 0 : i32
    return %c0_i32, %c0_i32_0 : i32, i32
  }
  func.func @transform_5(%arg0: i32) -> (i32, i32, i32) {
    %c0_i32 = arith.constant 0 : i32
    %c0_i32_0 = arith.constant 0 : i32
    %c0_i32_1 = arith.constant 0 : i32
    %c0_i32_2 = arith.constant 0 : i32
    return %c0_i32, %c0_i32_0, %c0_i32_1 : i32, i32, i32
  }
  func.func @transform_6(%arg0: i32) -> (i32, i32) {
    %c0_i32 = arith.constant 0 : i32
    %c0_i32_0 = arith.constant 0 : i32
    %c0_i32_1 = arith.constant 0 : i32
    return %c0_i32, %c0_i32_0 : i32, i32
  }
  func.func @transform_7(%arg0: i32) -> (i32, i32) {
    %c0_i32 = arith.constant 0 : i32
    %c0_i32_0 = arith.constant 0 : i32
    %c0_i32_1 = arith.constant 0 : i32
    return %c0_i32, %c0_i32_0 : i32, i32
  }
  func.func @transform_8(%arg0: i32) -> (i32, i32) {
    %c0_i32 = arith.constant 0 : i32
    %c0_i32_0 = arith.constant 0 : i32
    %c0_i32_1 = arith.constant 0 : i32
    return %c0_i32, %c0_i32_0 : i32, i32
  }
  func.func @transform_9(%arg0: i32) -> (i32, i32) {
    %c0_i32 = arith.constant 0 : i32
    %c0_i32_0 = arith.constant 0 : i32
    %c0_i32_1 = arith.constant 0 : i32
    return %c0_i32, %c0_i32_0 : i32, i32
  }
}

</mosaic_0001>

<bundles_post_ra>
// kernel: tpu_custom_call.1
= control target key start
LH: loop header
LB: loop body
LE: loop exit
PB: predicated region body
PF: predicated region fallthrough
CT: control target
= control target key end

     0   :  { %14 = vsyncpa [#allocation5], 0  ;;  %s2646_s0 = inlined_call_operand.hbm [shape: f32[32,64], index: 0, kind: input, shape index: {}]   ;;  %s2647_s1 = inlined_call_operand.hbm [shape: f32[3,64,128], index: 1, kind: input, shape index: {}]   ;;  %s2648_s2 = inlined_call_operand.hbm [shape: f32[128,128], index: 2, kind: input, shape index: {}]   ;;  %s2649_s3 = inlined_call_operand.vmem [shape: f32[1,128], index: 3, kind: input, shape index: {}]   ;;  %s2650_s4 = inlined_call_operand.vmem [shape: f32[1,128], index: 4, kind: input, shape index: {}]   ;;  %s2651_s5 = inlined_call_operand.hbm [shape: f32[3,128,128], index: 5, kind: input, shape index: {}]   ;;  %s2652_s6 = inlined_call_operand.hbm [shape: f32[128,128], index: 6, kind: input, shape index: {}]   ;;  %s2653_s7 = inlined_call_operand.vmem [shape: f32[1,128], index: 7, kind: input, shape index: {}]   ;;  %s2654_s8 = inlined_call_operand.vmem [shape: f32[1,128], index: 8, kind: input, shape index: {}]   ;;  %s2655_s9 = inlined_call_operand.hbm [shape: f32[32,128], index: 9, kind: output, shape index: {}]  }
   0x1   :  { %15 = vsyncpa [#allocation8], 0 }
   0x2   :  { %16 = vsyncpa [#allocation11], 0 }
   0x3   :  { %17 = vsyncpa [#allocation6], 0  ;;  %s2250_s30 = smov [#allocation7]   ;;  %s2251_s11 = smov [#allocation10]  }
   0x4   :  { %s35_s10 = sshll.u32 %s2250_s30, 4  ;;  %s63_s12 = sshll.u32 %s2251_s11, 4  ;;  %s36_s10 = int_to_ptr.vmem [resolvable:$true] %s35_s10  ;;  %s2311_s12 = int_to_ptr.vmem [resolvable:$true] %s63_s12 }
   0x5   :  { %s2110_s15 = scalar_lea.hbm %s2647_s1, 3072 }
   0x6   :  { %p2111_p0 = scmp.ne.s32.totalorder %s2647_s1, %s2110_s15  ;;  %p2114_p1 = scmp.lt.u32.totalorder %s2110_s15, %s2647_s1 }
   0x8   :  { %p2116_p2 = pnand %p2114_p1, %p2111_p0 }
   0xa   :  { %2119 = shalt.err (!%p2116_p2)
}
   0xb   :  { %s2120_s20 = scalar_lea.vmem %s36_s10, 3072  ;;  %p2125_p4 = scmp.lt.s32.totalorder %s36_s10, %s36_s10 }
   0xc   :  { %p2121_p3 = scmp.ne.s32.totalorder %s36_s10, %s2120_s20  ;;  %p2126_p5 = scmp.lt.s32.totalorder %s2120_s20, %s2120_s20 }
   0xe   :  { %p2127_p6 = por %p2126_p5, %p2125_p4 }
  0x10   :  { %p2128_p7 = pnand %p2127_p6, %p2121_p3 }
  0x12   :  { %2131 = shalt.err (!%p2128_p7)
}
  0x13   :  { %s2252_s21 = smov 128   ;;  %s2253_s22 = smov 8  }
  0x14   :  { %41 = dma.hbm_to_vmem [thread:$0]  %s2647_s1, 3072, %s36_s10, [#allocation8], %s2252_s21, %s2252_s21, %s2253_s22  }
  0x15   :  { %s2132_s27 = scalar_lea.hbm %s2651_s5, 6144 }
  0x16   :  { %p2133_p8 = scmp.ne.s32.totalorder %s2651_s5, %s2132_s27  ;;  %p2136_p9 = scmp.lt.u32.totalorder %s2132_s27, %s2651_s5 }
  0x18   :  { %p2138_p10 = pnand %p2136_p9, %p2133_p8 }
  0x1a   :  { %2141 = shalt.err (!%p2138_p10)
}
  0x1b   :  { %s2142_s13 = scalar_lea.vmem %s2311_s12, 6144  ;;  %p2147_p12 = scmp.lt.s32.totalorder %s2311_s12, %s2311_s12 }
  0x1c   :  { %p2143_p11 = scmp.ne.s32.totalorder %s2311_s12, %s2142_s13  ;;  %p2148_p13 = scmp.lt.s32.totalorder %s2142_s13, %s2142_s13 }
  0x1e   :  { %p2149_p0 = por %p2148_p13, %p2147_p12 }
  0x20   :  { %p2150_p1 = pnand %p2149_p0, %p2143_p11 }
  0x22   :  { %2153 = shalt.err (!%p2150_p1)
}
  0x23   :  { %69 = dma.hbm_to_vmem [thread:$0]  %s2651_s5, 6144, %s2311_s12, [#allocation11], %s2252_s21, %s2252_s21, %s2253_s22  }
  0x24   :  { %s2254_s14 = smov [#allocation4]   ;;  %s2255_s16 = smov [#allocation9]  }
  0x25   :  { %s23_s15 = sshll.u32 %s2254_s14, 4  ;;  %s47_s17 = sshll.u32 %s2255_s16, 4  ;;  %s24_s15 = int_to_ptr.vmem [resolvable:$true] %s23_s15  ;;  %s2348_s17 = int_to_ptr.vmem [resolvable:$true] %s47_s17 }
  0x26   :  { %s2154_s20 = scalar_lea.hbm %s2646_s0, 512 }
  0x27   :  { %p2155_p2 = scmp.ne.s32.totalorder %s2646_s0, %s2154_s20  ;;  %p2158_p3 = scmp.lt.u32.totalorder %s2154_s20, %s2646_s0 }
  0x29   :  { %p2160_p4 = pnand %p2158_p3, %p2155_p2 }
  0x2b   :  { %2163 = shalt.err (!%p2160_p4)
}
  0x2c   :  { %s2164_s5 = scalar_lea.vmem %s24_s15, 512  ;;  %p2169_p6 = scmp.lt.s32.totalorder %s24_s15, %s24_s15 }
  0x2d   :  { %p2165_p5 = scmp.ne.s32.totalorder %s24_s15, %s2164_s5  ;;  %p2170_p7 = scmp.lt.s32.totalorder %s2164_s5, %s2164_s5 }
  0x2f   :  { %p2171_p8 = por %p2170_p7, %p2169_p6 }
  0x31   :  { %p2172_p9 = pnand %p2171_p8, %p2165_p5 }
  0x33   :  { %2175 = shalt.err (!%p2172_p9)
}
  0x34   :  { %29 = dma.hbm_to_vmem [thread:$0]  %s2646_s0, 512, %s24_s15, [#allocation5], %s2252_s21, %s2252_s21, %s2253_s22  }
  0x35   :  { %s2176_s30 = scalar_lea.hbm %s2648_s2, 2048 }
  0x36   :  { %p2177_p10 = scmp.ne.s32.totalorder %s2648_s2, %s2176_s30  ;;  %p2180_p11 = scmp.lt.u32.totalorder %s2176_s30, %s2648_s2 }
  0x38   :  { %p2182_p12 = pnand %p2180_p11, %p2177_p10 }
  0x3a   :  { %2185 = shalt.err (!%p2182_p12)
}
  0x3b   :  { %s2186_s14 = scalar_lea.vmem %s2348_s17, 2048  ;;  %p2191_p0 = scmp.lt.s32.totalorder %s2348_s17, %s2348_s17 }
  0x3c   :  { %p2187_p13 = scmp.ne.s32.totalorder %s2348_s17, %s2186_s14  ;;  %p2192_p1 = scmp.lt.s32.totalorder %s2186_s14, %s2186_s14 }
  0x3e   :  { %p2193_p2 = por %p2192_p1, %p2191_p0 }
  0x40   :  { %p2194_p3 = pnand %p2193_p2, %p2187_p13 }
  0x42   :  { %2197 = shalt.err (!%p2194_p3)
}
  0x43   :  { %53 = dma.hbm_to_vmem [thread:$0]  %s2648_s2, 2048, %s2348_s17, [#allocation8], %s2252_s21, %s2252_s21, %s2253_s22  }
  0x44   :  { %s2256_s16 = smov [#allocation12]   ;;  %s2198_s23 = scalar_lea.hbm %s2652_s6, 2048 }
  0x45   :  { %s75_s18 = sshll.u32 %s2256_s16, 4  ;;  %p2199_p4 = scmp.ne.s32.totalorder %s2652_s6, %s2198_s23  ;;  %s76_s18 = int_to_ptr.vmem [resolvable:$true] %s75_s18 }
  0x46   :  { %p2202_p5 = scmp.lt.u32.totalorder %s2198_s23, %s2652_s6 }
  0x48   :  { %p2204_p6 = pnand %p2202_p5, %p2199_p4 }
  0x4a   :  { %2207 = shalt.err (!%p2204_p6)
}
  0x4b   :  { %s2208_s12 = scalar_lea.vmem %s76_s18, 2048  ;;  %p2213_p8 = scmp.lt.s32.totalorder %s76_s18, %s76_s18 }
  0x4c   :  { %p2209_p7 = scmp.ne.s32.totalorder %s76_s18, %s2208_s12  ;;  %p2214_p9 = scmp.lt.s32.totalorder %s2208_s12, %s2208_s12 }
  0x4e   :  { %p2215_p10 = por %p2214_p9, %p2213_p8 }
  0x50   :  { %p2216_p11 = pnand %p2215_p10, %p2209_p7 }
  0x52   :  { %2219 = shalt.err (!%p2216_p11)
}
  0x53   :  { %81 = dma.hbm_to_vmem [thread:$0]  %s2652_s6, 2048, %s76_s18, [#allocation11], %s2252_s21, %s2252_s21, %s2253_s22  }
  0x54   :  { %2242 = dma.done.wait [#allocation5], 512  }
  0x55   :  { %2243 = vsyncadd [#allocation5], 4294966784 }
  0x56   :  { %2244 = dma.done.wait [#allocation8], 5120  }
  0x57   :  { %2245 = vsyncadd [#allocation8], 4294962176 }
  0x58   :  { %2246 = dma.done.wait [#allocation11], 8192  }
  0x59   :  { %2247 = vsyncadd [#allocation11], 4294959104  ;;  %vm105_vm0 = vcmask 516096   ;;  %v2257_v0 = vmov 0.0|0.0   ;;  %v2258_v1 = vmov 0.0   ;;  %vm2259_vm1 = vmmov 0  }
  0x5a   :  { %1891 = vmatprep.subr.bf16.mxu0 %v2257_v0  ;;  %1903 = vmatprep.subr.bf16.mxu1 %v2257_v0  ;;  %705 = vst [vmem:[#allocation3] sm:$0x1] %v2258_v1  ;;  %706 = vst [vmem:[#allocation3 + $0x11] sm:$0x1] %v2258_v1  ;;  %v120_v2 = vld [vmem:[#allocation7] sm:$0xff]  ;;  %v121_v3 = vld [vmem:[#allocation7 + $0x8] sm:$0xff] }
  0x5b   :  { %709 = vst [vmem:[#allocation3 + $0x12] sm:$0x1] %v2258_v1  ;;  %710 = vst [vmem:[#allocation3 + $0x23] sm:$0x1] %v2258_v1  ;;  %1533 = vmatprep.mubr.msk.f32.mxu0 %vm2259_vm1, %v2258_v1  ;;  %1564 = vmatprep.mubr.msk.f32.mxu1 %vm2259_vm1, %v2258_v1  ;;  %v234_v4 = vld [vmem:[#allocation7 + $0x40] sm:$0xff]  ;;  %v1892_v5 = vpack.c.bf16 %v121_v3, %v120_v2  ;;  %v235_v6 = vld [vmem:[#allocation7 + $0x48] sm:$0xff] }
  0x5c   :  { %106 = vst.msk [vmem:[#allocation2] sm:$0x1] %vm105_vm0, %v2258_v1  ;;  %107 = vst.msk [vmem:[#allocation2 + $0x11] sm:$0x1] %vm105_vm0, %v2258_v1  ;;  %v122_v7 = vld [vmem:[#allocation7 + $0x10] sm:$0xff]  ;;  %v123_v8 = vld [vmem:[#allocation7 + $0x18] sm:$0xff]  ;;  %v1904_v9 = vpack.c.bf16 %v235_v6, %v234_v4 }
  0x5d   :  { %111 = vst.msk [vmem:[#allocation2 + $0x12] sm:$0x1] %vm105_vm0, %v2258_v1  ;;  %112 = vst.msk [vmem:[#allocation2 + $0x23] sm:$0x1] %vm105_vm0, %v2258_v1  ;;  %v236_v10 = vld [vmem:[#allocation7 + $0x50] sm:$0xff]  ;;  %v237_v11 = vld [vmem:[#allocation7 + $0x58] sm:$0xff]  ;;  %1893 = vmatpush3.bf16.msra.mxu0 %v1892_v5  ;;  %v1895_v12 = vpack.c.bf16 %v123_v8, %v122_v7 }
  0x5e   :  { %vm108_vm2 = vcmask 523264   ;;  %1905 = vmatpush3.bf16.msra.mxu1 %v1904_v9  ;;  %1894 = vmatprep.subr.bf16.mxu0 %v2257_v0  ;;  %v1907_v13 = vpack.c.bf16 %v237_v11, %v236_v10  ;;  %v124_v14 = vld [vmem:[#allocation7 + $0x20] sm:$0xff]  ;;  %v125_v15 = vld [vmem:[#allocation7 + $0x28] sm:$0xff]  ;;  %v103_v21 = vld [vmem:[#allocation4 + $0x10] sm:$0xff]  ;;  %vm434_vm3 = vcmask 1046528   ;;  %vm447_vm4 = vcmask 1045504  }
  0x5f   :  { %1906 = vmatprep.subr.bf16.mxu1 %v2257_v0  ;;  %v238_v16 = vld [vmem:[#allocation7 + $0x60] sm:$0xff]  ;;  %v239_v17 = vld [vmem:[#allocation7 + $0x68] sm:$0xff]  ;;  %v1898_v20 = vpack.c.bf16 %v125_v15, %v124_v14  ;;  %v126_v23 = vld [vmem:[#allocation7 + $0x30] sm:$0xff]  ;;  %113 = vst.msk [vmem:[#allocation2 + $0x13] sm:$0xff] %vm108_vm2, %v103_v21  ;;  %s2260_s13 = smov [#allocation13]  }
  0x60   :  { %v101_v18 = vld [vmem:[#allocation4] sm:$0xff]  ;;  %v102_v19 = vld [vmem:[#allocation4 + $0x8] sm:$0xff]  ;;  %v1910_v22 = vpack.c.bf16 %v239_v17, %v238_v16  ;;  %v127_v24 = vld [vmem:[#allocation7 + $0x38] sm:$0xff]  ;;  %s1318_s1 = sshll.u32 %s2260_s13, 4  ;;  %s1319_s1 = int_to_ptr.vmem [resolvable:$true] %s1318_s1 }
  0x61   :  { %109 = vst.msk [vmem:[#allocation2 + $0x1] sm:$0xff] %vm108_vm2, %v101_v18  ;;  %1896 = vmatpush3.bf16.msra.mxu0 %v1895_v12  ;;  %110 = vst.msk [vmem:[#allocation2 + $0x9] sm:$0xff] %vm108_vm2, %v102_v19  ;;  %v104_v25 = vld [vmem:[#allocation4 + $0x18] sm:$0xff]  ;;  %v240_v26 = vld [vmem:[#allocation7 + $0x70] sm:$0xff]  ;;  %v1901_v28 = vpack.c.bf16 %v127_v24, %v126_v23  ;;  %p2225_p13 = scmp.lt.s32.totalorder %s1319_s1, %s1319_s1 }
  0x62   :  { %1908 = vmatpush3.bf16.msra.mxu1 %v1907_v13  ;;  %1897 = vmatprep.subr.bf16.mxu0 %v2257_v0  ;;  %v241_v27 = vld [vmem:[#allocation7 + $0x78] sm:$0xff]  ;;  %114 = vst.msk [vmem:[#allocation2 + $0x1b] sm:$0xff] %vm108_vm2, %v104_v25  ;;  %v333_v30 = vld [vmem:[#allocation7 + $0x80] sm:$0xff]  ;;  %v334_v31 = vld [vmem:[#allocation7 + $0x88] sm:$0xff] }
  0x63   :  { %1909 = vmatprep.subr.bf16.mxu1 %v2257_v0  ;;  %v1913_v29 = vpack.c.bf16 %v241_v27, %v240_v26  ;;  %v1916_v33 = vpack.c.bf16 %v334_v31, %v333_v30  ;;  %v335_v34 = vld [vmem:[#allocation7 + $0x90] sm:$0xff]  ;;  %v336_v35 = vld [vmem:[#allocation7 + $0x98] sm:$0xff]  ;;  %v337_v38 = vld [vmem:[#allocation7 + $0xa0] sm:$0xff] }
  0x64   :  { %v1919_v37 = vpack.c.bf16 %v336_v35, %v335_v34  ;;  %v338_v39 = vld [vmem:[#allocation7 + $0xa8] sm:$0xff]  ;;  %v339_v42 = vld [vmem:[#allocation7 + $0xb0] sm:$0xff]  ;;  %v340_v43 = vld [vmem:[#allocation7 + $0xb8] sm:$0xff] }
  0x65   :  { %1899 = vmatpush3.bf16.msra.mxu0 %v1898_v20  ;;  %v1922_v41 = vpack.c.bf16 %v338_v39, %v337_v38  ;;  %v1925_v45 = vpack.c.bf16 %v340_v43, %v339_v42  ;;  %v513_v47 = vld [vmem:[#allocation9] sm:$0xff]  ;;  %v514_v48 = vld [vmem:[#allocation9 + $0x8] sm:$0xff]  ;;  %v515_v50 = vld [vmem:[#allocation9 + $0x10] sm:$0xff] }
  0x66   :  { %1911 = vmatpush3.bf16.msra.mxu1 %v1910_v22  ;;  %1900 = vmatprep.subr.bf16.mxu0 %v2257_v0  ;;  %v1928_v49 = vpack.c.bf16 %v514_v48, %v513_v47  ;;  %v516_v51 = vld [vmem:[#allocation9 + $0x18] sm:$0xff]  ;;  %v517_v53 = vld [vmem:[#allocation9 + $0x20] sm:$0xff]  ;;  %v518_v54 = vld [vmem:[#allocation9 + $0x28] sm:$0xff] }
  0x67   :  { %1912 = vmatprep.subr.bf16.mxu1 %v2257_v0  ;;  %v1931_v52 = vpack.c.bf16 %v516_v51, %v515_v50  ;;  %v1934_v55 = vpack.c.bf16 %v518_v54, %v517_v53  ;;  %v519_v56 = vld [vmem:[#allocation9 + $0x30] sm:$0xff]  ;;  %v520_v57 = vld [vmem:[#allocation9 + $0x38] sm:$0xff]  ;;  %v521_v59 = vld [vmem:[#allocation9 + $0x40] sm:$0xff] }
  0x68   :  { %v115_v32 = vld [vmem:[#allocation2] sm:$0xff]  ;;  %v116_v36 = vld [vmem:[#allocation2 + $0x8] sm:$0xff]  ;;  %v117_v40 = vld [vmem:[#allocation2 + $0x10] sm:$0xff]  ;;  %v1937_v58 = vpack.c.bf16 %v520_v57, %v519_v56 }
  0x69   :  { %1902 = vmatpush3.bf16.msra.mxu0 %v1901_v28  ;;  %v118_v44 = vld [vmem:[#allocation2 + $0x18] sm:$0xff]  ;;  %v119_v46 = vld [vmem:[#allocation2 + $0x20] sm:$0xf]  ;;  %v524_v63 = vld [vmem:[#allocation9 + $0x58] sm:$0xff] }
  0x6a   :  { %1914 = vmatpush3.bf16.msra.mxu1 %v1913_v29  ;;  %1915 = vmatprep.subr.bf16.mxu0 %v2257_v0  ;;  %v522_v60 = vld [vmem:[#allocation9 + $0x48] sm:$0xff]  ;;  %v523_v62 = vld [vmem:[#allocation9 + $0x50] sm:$0xff]  ;;  %v525_v3 = vld [vmem:[#allocation9 + $0x60] sm:$0xff] }
  0x6b   :  { %1927 = vmatprep.subr.bf16.mxu1 %v2257_v0  ;;  %v1940_v61 = vpack.c.bf16 %v522_v60, %v521_v59  ;;  %v1943_v2 = vpack.c.bf16 %v524_v63, %v523_v62  ;;  %v526_v4 = vld [vmem:[#allocation9 + $0x68] sm:$0xff]  ;;  %v527_v6 = vld [vmem:[#allocation9 + $0x70] sm:$0xff]  ;;  %v528_v7 = vld [vmem:[#allocation9 + $0x78] sm:$0xff] }
  0x6c   :  { %1534 = vmatmul.mubr.msk.f32.vlgmr.msra.gmra.mrb[0].mxu0 %vm108_vm2, %v115_v32  ;;  %v1946_v5 = vpack.c.bf16 %v526_v4, %v525_v3  ;;  %v1949_v8 = vpack.c.bf16 %v528_v7, %v527_v6 }
  0x6d   :  { %1565 = vmatmul.mubr.msk.f32.vlgmr.msra.gmra.mrb[0].mxu1 %vm108_vm2, %v115_v32  ;;  %1917 = vmatpush3.bf16.msra.mxu0 %v1916_v33 }
  0x6e   :  { %1536 = vmatprep.mubr.msk.f32.mxu0 %vm2259_vm1, %v2258_v1  ;;  %1567 = vmatprep.mubr.msk.f32.mxu1 %vm2259_vm1, %v2258_v1 }
  0x6f   :  { %1918 = vmatprep.subr.bf16.mxu0 %v2257_v0  ;;  %1929 = vmatpush3.bf16.msra.mxu1 %v1928_v49 }
  0x70   :  { %1537 = vmatmul.mubr.msk.f32.gmra.mrb[2].mxu0 %vm108_vm2, %v116_v36  ;;  %1930 = vmatprep.subr.bf16.mxu1 %v2257_v0 }
  0x71   :  { %1568 = vmatmul.mubr.msk.f32.gmra.mrb[2].mxu1 %vm108_vm2, %v116_v36  ;;  %1920 = vmatpush3.bf16.msra.mxu0 %v1919_v37 }
  0x72   :  { %1539 = vmatprep.mubr.msk.f32.mxu0 %vm2259_vm1, %v2258_v1  ;;  %1570 = vmatprep.mubr.msk.f32.mxu1 %vm2259_vm1, %v2258_v1 }
  0x73   :  { %1921 = vmatprep.subr.bf16.mxu0 %v2257_v0  ;;  %1932 = vmatpush3.bf16.msra.mxu1 %v1931_v52 }
  0x74   :  { %1540 = vmatmul.mubr.msk.f32.gmra.mrb[4].mxu0 %vm108_vm2, %v117_v40  ;;  %1933 = vmatprep.subr.bf16.mxu1 %v2257_v0 }
  0x75   :  { %1571 = vmatmul.mubr.msk.f32.gmra.mrb[4].mxu1 %vm108_vm2, %v117_v40  ;;  %1542 = vmatprep.mubr.msk.f32.mxu0 %vm2259_vm1, %v2258_v1 }
  0x76   :  { %1573 = vmatprep.mubr.msk.f32.mxu1 %vm2259_vm1, %v2258_v1  ;;  %1923 = vmatpush3.bf16.msra.mxu0 %v1922_v41 }
  0x77   :  { %1924 = vmatprep.subr.bf16.mxu0 %v2257_v0  ;;  %1935 = vmatpush3.bf16.msra.mxu1 %v1934_v55 }
  0x78   :  { %1543 = vmatmul.mubr.msk.f32.gmra.mrb[6].mxu0 %vm108_vm2, %v118_v44  ;;  %1936 = vmatprep.subr.bf16.mxu1 %v2257_v0 }
  0x79   :  { %1574 = vmatmul.mubr.msk.f32.gmra.mrb[6].mxu1 %vm108_vm2, %v118_v44  ;;  %1545 = vmatprep.mubr.msk.f32.mxu0 %vm2259_vm1, %v2258_v1 }
  0x7a   :  { %1576 = vmatprep.mubr.msk.f32.mxu1 %vm2259_vm1, %v2258_v1  ;;  %1926 = vmatpush3.bf16.msra.mxu0 %v1925_v45 }
  0x7b   :  { %1951 = vmatprep.subr.bf16.mxu0 %v2257_v0  ;;  %1938 = vmatpush3.bf16.msra.mxu1 %v1937_v58 }
  0x7c   :  { %1546 = vmatmul.mubr.msk.f32.gmra.mrb[8].mxu0 %vm108_vm2, %v119_v46  ;;  %1939 = vmatprep.subr.bf16.mxu1 %v2257_v0 }
  0x7d   :  { %1577 = vmatmul.mubr.msk.f32.gmra.mrb[8].mxu1 %vm108_vm2, %v119_v46  ;;  %1595 = vmatprep.mubr.msk.f32.mxu0 %vm2259_vm1, %v2258_v1 }
  0x7e   :  { %1642 = vmatprep.mubr.msk.f32.mxu1 %vm2259_vm1, %v2258_v1 }
  0x7f   :  { %1941 = vmatpush3.bf16.msra.mxu1 %v1940_v61 }
  0x80   :  { %1596 = vmatmul.mubr.msk.f32.vlgmr.msra.gmra.mrb[10].mxu0 %vm108_vm2, %v115_v32  ;;  %1942 = vmatprep.subr.bf16.mxu1 %v2257_v0 }
  0x81   :  { %1598 = vmatprep.mubr.msk.f32.mxu0 %vm2259_vm1, %v2258_v1  ;;  %1953 = vmatpush3.bf16.msra.mxu0 %v1928_v49 }
  0x82   :  { %1954 = vmatprep.subr.bf16.mxu0 %v2257_v0 }
  0x83   :  { %1944 = vmatpush3.bf16.msra.mxu1 %v1943_v2 }
  0x84   :  { %1599 = vmatmul.mubr.msk.f32.gmra.mrb[12].mxu0 %vm108_vm2, %v116_v36  ;;  %1945 = vmatprep.subr.bf16.mxu1 %v2257_v0 }
  0x85   :  { %1601 = vmatprep.mubr.msk.f32.mxu0 %vm2259_vm1, %v2258_v1  ;;  %1956 = vmatpush3.bf16.msra.mxu0 %v1931_v52 }
  0x86   :  { %1957 = vmatprep.subr.bf16.mxu0 %v2257_v0 }
  0x87   :  { %1947 = vmatpush3.bf16.msra.mxu1 %v1946_v5 }
  0x88   :  { %1602 = vmatmul.mubr.msk.f32.gmra.mrb[14].mxu0 %vm108_vm2, %v117_v40  ;;  %1948 = vmatprep.subr.bf16.mxu1 %v2257_v0 }
  0x89   :  { %1604 = vmatprep.mubr.msk.f32.mxu0 %vm2259_vm1, %v2258_v1  ;;  %1959 = vmatpush3.bf16.msra.mxu0 %v1934_v55 }
  0x8a   :  { %1960 = vmatprep.subr.bf16.mxu0 %v2257_v0 }
  0x8b   :  { %1950 = vmatpush3.bf16.msra.mxu1 %v1949_v8 }
  0x8c   :  { %1605 = vmatmul.mubr.msk.f32.gmra.mrb[16].mxu0 %vm108_vm2, %v118_v44  ;;  %1975 = vmatprep.subr.bf16.mxu1 %v2257_v0 }
  0x8d   :  { %1607 = vmatprep.mubr.msk.f32.mxu0 %vm2259_vm1, %v2258_v1  ;;  %1962 = vmatpush3.bf16.msra.mxu0 %v1937_v58 }
  0x8e   :  { %1963 = vmatprep.subr.bf16.mxu0 %v2257_v0 }
  0x90   :  { %1608 = vmatmul.mubr.msk.f32.gmra.mrb[18].mxu0 %vm108_vm2, %v119_v46 }
  0x91   :  { %1677 = vmatprep.mubr.msk.f32.mxu0 %vm2259_vm1, %v2258_v1  ;;  %1965 = vmatpush3.bf16.msra.mxu0 %v1940_v61 }
  0x92   :  { %1966 = vmatprep.subr.bf16.mxu0 %v2257_v0 }
  0x95   :  { %1968 = vmatpush3.bf16.msra.mxu0 %v1943_v2 }
  0x96   :  { %1969 = vmatprep.subr.bf16.mxu0 %v2257_v0 }
  0x99   :  { %1971 = vmatpush3.bf16.msra.mxu0 %v1946_v5 }
  0x9a   :  { %1972 = vmatprep.subr.bf16.mxu0 %v2257_v0 }
  0x9d   :  { %1974 = vmatpush3.bf16.msra.mxu0 %v1949_v8 }
  0x9e   :  { %1999 = vmatprep.subr.bf16.mxu0 %v2257_v0 }
 0x13f   :  { %v209_v9 = vpop.f32.mrb[0].mxu0 }
 0x140   :  { %v1535_v10 = vpop.f32.mrb[1].mxu0  ;;  %v308_v11 = vpop.f32.mrb[0].mxu1 }
 0x141   :  { %v1566_v12 = vpop.f32.mrb[1].mxu1  ;;  %v435_v13 = vrot.slane %v308_v11, 1 }
 0x143   :  { %v214_v14 = vpop.f32.mrb[2].mxu0 }
 0x144   :  { %v313_v15 = vpop.f32.mrb[2].mxu1  ;;  %v1538_v16 = vpop.f32.mrb[3].mxu0 }
 0x145   :  { %v436_v17 = vrot.slane %v313_v15, 1  ;;  %v1569_v18 = vpop.f32.mrb[3].mxu1 }
 0x147   :  { %v437_v19 = vsel %vm434_vm3, %v435_v13, %v436_v17  ;;  %v219_v20 = vpop.f32.mrb[4].mxu0 }
 0x148   :  { %v442_v21 = vadd.f32 %v437_v19, %v209_v9  ;;  %v318_v22 = vpop.f32.mrb[4].mxu1  ;;  %v1541_v23 = vpop.f32.mrb[5].mxu0 }
 0x149   :  { %v438_v24 = vrot.slane %v318_v22, 1  ;;  %v1572_v25 = vpop.f32.mrb[5].mxu1 }
 0x14b   :  { %v439_v26 = vsel %vm434_vm3, %v436_v17, %v438_v24  ;;  %v224_v27 = vpop.f32.mrb[6].mxu0 }
 0x14c   :  { %v443_v28 = vadd.f32 %v439_v26, %v214_v14  ;;  %v323_v29 = vpop.f32.mrb[6].mxu1  ;;  %v1544_v30 = vpop.f32.mrb[7].mxu0 }
 0x14d   :  { %v459_v31 = vrot.slane %v323_v29, 1  ;;  %v1575_v32 = vpop.f32.mrb[7].mxu1 }
 0x14e   :  { %v718_v32 = vld [vmem:[#allocation10] sm:$0xff] }
 0x14f   :  { %v460_v33 = vsel %vm434_vm3, %v438_v24, %v459_v31  ;;  %v229_v34 = vpop.f32.mrb[8].mxu0 }
 0x150   :  { %v466_v35 = vadd.f32 %v460_v33, %v219_v20  ;;  %v328_v36 = vpop.f32.mrb[8].mxu1  ;;  %v1547_v37 = vpop.f32.mrb[9].mxu0  ;;  %v719_v33 = vld [vmem:[#allocation10 + $0x8] sm:$0xff] }
 0x151   :  { %v461_v38 = vrot.slane %v328_v36, 1  ;;  %v1578_v39 = vpop.f32.mrb[9].mxu1  ;;  %v826_v36 = vld [vmem:[#allocation10 + $0x88] sm:$0xff] }
 0x152   :  { %v721_v39 = vld [vmem:[#allocation10 + $0x18] sm:$0xff] }
 0x153   :  { %v462_v40 = vsel %vm434_vm3, %v459_v31, %v461_v38  ;;  %v468_v41 = vadd.f32 %v461_v38, %v229_v34  ;;  %v407_v42 = vpop.f32.mrb[10].mxu0  ;;  %v1976_v34 = vpack.c.bf16 %v719_v33, %v718_v32  ;;  %v720_v38 = vld [vmem:[#allocation10 + $0x10] sm:$0xff] }
 0x154   :  { %v467_v43 = vadd.f32 %v462_v40, %v224_v27  ;;  %v1597_v44 = vpop.f32.mrb[11].mxu0  ;;  %v448_v46 = vrot.slane %v407_v42, 2  ;;  %v1979_v40 = vpack.c.bf16 %v721_v39, %v720_v38  ;;  %v828_v42 = vld [vmem:[#allocation10 + $0x98] sm:$0xff]  ;;  %v674_v33 = vld [vmem:[%s2649_s3] sm:$0x1] }
 0x155   :  { %v722_v44 = vld [vmem:[#allocation10 + $0x20] sm:$0xff] }
 0x157   :  { %v412_v45 = vpop.f32.mrb[12].mxu0 }
 0x158   :  { %v449_v47 = vrot.slane %v412_v45, 2  ;;  %v1600_v48 = vpop.f32.mrb[13].mxu0  ;;  %v723_v45 = vld [vmem:[#allocation10 + $0x28] sm:$0xff] }
 0x159   :  { %v830_v48 = vld [vmem:[#allocation10 + $0xa8] sm:$0xff] }
 0x15a   :  { %v450_v49 = vsel %vm447_vm4, %v448_v46, %v449_v47  ;;  %v1982_v46 = vpack.c.bf16 %v723_v45, %v722_v44 }
 0x15b   :  { %v2496_v50 = vadd.f32 %v450_v49, %v442_v21  ;;  %v417_v51 = vpop.f32.mrb[14].mxu0 }
 0x15c   :  { %v451_v52 = vrot.slane %v417_v51, 2  ;;  %v1603_v53 = vpop.f32.mrb[15].mxu0  ;;  %v724_v51 = vld [vmem:[#allocation10 + $0x30] sm:$0xff] }
 0x15d   :  { %v500_v9 = vmul.f32 %v2496_v50, %v2496_v50 }
 0x15e   :  { %v452_v54 = vsel %vm447_vm4, %v449_v47, %v451_v52  ;;  %v829_v47 = vld [vmem:[#allocation10 + $0xa0] sm:$0xff] }
 0x15f   :  { %v2499_v55 = vadd.f32 %v452_v54, %v443_v28  ;;  %v422_v56 = vpop.f32.mrb[16].mxu0  ;;  %v2006_v49 = vpack.c.bf16 %v830_v48, %v829_v47  ;;  %v831_v54 = vld [vmem:[#allocation10 + $0xb0] sm:$0xff] }
 0x160   :  { %v471_v57 = vrot.slane %v422_v56, 2  ;;  %v1606_v58 = vpop.f32.mrb[17].mxu0  ;;  %v832_v56 = vld [vmem:[#allocation10 + $0xb8] sm:$0xff] }
 0x161   :  { %v501_v5 = vmul.f32 %v2499_v55, %v2499_v55  ;;  %v491_v10 = vadd.f32 %v2499_v55, %v2496_v50  ;;  %v726_v58 = vld [vmem:[#allocation10 + $0x40] sm:$0xff] }
 0x162   :  { %v472_v59 = vsel %vm447_vm4, %v451_v52, %v471_v57  ;;  %v725_v52 = vld [vmem:[#allocation10 + $0x38] sm:$0xff] }
 0x163   :  { %v478_v60 = vadd.f32 %v472_v59, %v466_v35  ;;  %v427_v61 = vpop.f32.mrb[18].mxu0  ;;  %v504_v13 = vadd.f32 %v501_v5, %v500_v9  ;;  %v825_v35 = vld [vmem:[#allocation10 + $0x80] sm:$0xff]  ;;  %v1985_v53 = vpack.c.bf16 %v725_v52, %v724_v51  ;;  %v727_v59 = vld [vmem:[#allocation10 + $0x48] sm:$0xff]  ;;  %v835_v5 = vld [vmem:[#allocation10 + $0xd0] sm:$0xff] }
 0x164   :  { %v473_v62 = vrot.slane %v427_v61, 2  ;;  %v1609_v63 = vpop.f32.mrb[19].mxu0  ;;  %v2000_v37 = vpack.c.bf16 %v826_v36, %v825_v35  ;;  %v833_v61 = vld [vmem:[#allocation10 + $0xc0] sm:$0xff]  ;;  %v731_v9 = vld [vmem:[#allocation10 + $0x68] sm:$0xff] }
 0x165   :  { %v484_v7 = vrot.slane %v478_v60, 2  ;;  %v1988_v60 = vpack.c.bf16 %v727_v59, %v726_v58  ;;  %v936_v59 = vld [vmem:[#allocation10 + $0x120] sm:$0xff] }
 0x166   :  { %v474_v2 = vsel %vm447_vm4, %v471_v57, %v473_v62  ;;  %v480_v3 = vadd.f32 %v473_v62, %v468_v41  ;;  %v827_v41 = vld [vmem:[#allocation10 + $0x90] sm:$0xff]  ;;  %v2009_v57 = vpack.c.bf16 %v832_v56, %v831_v54  ;;  %v834_v62 = vld [vmem:[#allocation10 + $0xc8] sm:$0xff] }
 0x167   :  { %v479_v4 = vadd.f32 %v474_v2, %v467_v43  ;;  %v2003_v43 = vpack.c.bf16 %v828_v42, %v827_v41  ;;  %v2012_v63 = vpack.c.bf16 %v834_v62, %v833_v61  ;;  %v728_v2 = vld [vmem:[#allocation10 + $0x50] sm:$0xff] }
 0x168   :  { %v487_v6 = vrot.slane %v480_v3, 2  ;;  %v729_v3 = vld [vmem:[#allocation10 + $0x58] sm:$0xff] }
 0x169   :  { %v485_v8 = vrot.slane %v479_v4, 2  ;;  %v1991_v4 = vpack.c.bf16 %v729_v3, %v728_v2  ;;  %v939_v2 = vld [vmem:[#allocation10 + $0x138] sm:$0xff] }
 0x16b   :  { %v2510_v11 = vsel %vm447_vm4, %v484_v7, %v485_v8  ;;  %v2513_v12 = vsel %vm447_vm4, %v485_v8, %v487_v6  ;;  %v836_v6 = vld [vmem:[#allocation10 + $0xd8] sm:$0xff]  ;;  %v730_v8 = vld [vmem:[#allocation10 + $0x60] sm:$0xff] }
 0x16c   :  { %v492_v14 = vadd.f32 %v491_v10, %v2510_v11  ;;  %v502_v15 = vmul.f32 %v2510_v11, %v2510_v11  ;;  %v503_v17 = vmul.f32 %v2513_v12, %v2513_v12  ;;  %v2015_v7 = vpack.c.bf16 %v836_v6, %v835_v5  ;;  %v940_v5 = vld [vmem:[#allocation10 + $0x140] sm:$0xff]  ;;  %v941_v6 = vld [vmem:[#allocation10 + $0x148] sm:$0xff] }
 0x16d   :  { %v1994_v10 = vpack.c.bf16 %v731_v9, %v730_v8  ;;  %v2036_v8 = vpack.c.bf16 %v941_v6, %v940_v5  ;;  %v942_v9 = vld [vmem:[#allocation10 + $0x150] sm:$0xff] }
 0x16e   :  { %v493_v16 = vadd.f32 %v492_v14, %v2513_v12  ;;  %v505_v18 = vadd.f32 %v504_v13, %v502_v15  ;;  %v837_v13 = vld [vmem:[#allocation10 + $0xe0] sm:$0xff]  ;;  %v838_v14 = vld [vmem:[#allocation10 + $0xe8] sm:$0xff] }
 0x16f   :  { %v2018_v15 = vpack.c.bf16 %v838_v14, %v837_v13 }
 0x170   :  { %v494_v19 = vrot.slane %v493_v16, 4  ;;  %v506_v20 = vadd.f32 %v505_v18, %v503_v17  ;;  %v733_v17 = vld [vmem:[#allocation10 + $0x78] sm:$0xff]  ;;  %v839_v18 = vld [vmem:[#allocation10 + $0xf0] sm:$0xff] }
 0x172   :  { %v495_v21 = vadd.f32 %v494_v19, %v493_v16  ;;  %v507_v22 = vrot.slane %v506_v20, 4  ;;  %v732_v16 = vld [vmem:[#allocation10 + $0x70] sm:$0xff] }
 0x173   :  { %v1997_v19 = vpack.c.bf16 %v733_v17, %v732_v16  ;;  %v945_v16 = vld [vmem:[#allocation10 + $0x168] sm:$0xff] }
 0x174   :  { %v496_v23 = vrot.slane %v495_v21, 2  ;;  %v508_v24 = vadd.f32 %v507_v22, %v506_v20  ;;  %v840_v20 = vld [vmem:[#allocation10 + $0xf8] sm:$0xff] }
 0x176   :  { %v497_v25 = vadd.f32 %v496_v23, %v495_v21  ;;  %v509_v26 = vrot.slane %v508_v24, 2  ;;  %v2021_v21 = vpack.c.bf16 %v840_v20, %v839_v18  ;;  %v946_v18 = vld [vmem:[#allocation10 + $0x170] sm:$0xff] }
 0x178   :  { %v498_v27 = vrot.slane %v497_v25, 1  ;;  %v510_v28 = vadd.f32 %v509_v26, %v508_v24 }
 0x17a   :  { %v499_v29 = vadd.f32 %v498_v27, %v497_v25  ;;  %v511_v30 = vrot.slane %v510_v28, 1 }
 0x17c   :  { %1643 = vmatmul.mubr.f32.vlgmr.msra.gmra.mrb[10].mxu1 %v499_v29  ;;  %v512_v31 = vadd.f32 %v511_v30, %v510_v28 }
 0x17d   :  { %1712 = vmatprep.mubr.msk.f32.mxu1 %vm2259_vm1, %v2258_v1  ;;  %1977 = vmatpush3.bf16.msra.mxu1 %v1976_v34 }
 0x17e   :  { %1678 = vmatmul.mubr.f32.vlgmr.msra.gmra.mrb[20].mxu0 %v512_v31  ;;  %1978 = vmatprep.subr.bf16.mxu1 %v2257_v0  ;;  %v682_v31 = vlaneseq }
 0x17f   :  { %1759 = vmatprep.mubr.msk.f32.mxu0 %vm2259_vm1, %v2258_v1  ;;  %2001 = vmatpush3.bf16.msra.mxu0 %v2000_v37  ;;  %v678_v37 = vld [vmem:[%s2650_s4] sm:$0x1] }
 0x180   :  { %2002 = vmatprep.subr.bf16.mxu0 %v2257_v0  ;;  %v683_v32 = vshrl.u32 %v682_v31, 7 }
 0x181   :  { %1980 = vmatpush3.bf16.msra.mxu1 %v1979_v40 }
 0x182   :  { %1981 = vmatprep.subr.bf16.mxu1 %v2257_v0  ;;  %v2544_v34 = vsub.s32 0, %v683_v32  ;;  %v1126_v32 = vld [vmem:[#allocation12 + $0x40] sm:$0xff] }
 0x183   :  { %2004 = vmatpush3.bf16.msra.mxu0 %v2003_v43 }
 0x184   :  { %2005 = vmatprep.subr.bf16.mxu0 %v2257_v0 }
 0x185   :  { %1983 = vmatpush3.bf16.msra.mxu1 %v1982_v46 }
 0x186   :  { %1984 = vmatprep.subr.bf16.mxu1 %v2257_v0 }
 0x187   :  { %2007 = vmatpush3.bf16.msra.mxu0 %v2006_v49 }
 0x188   :  { %2008 = vmatprep.subr.bf16.mxu0 %v2257_v0 }
 0x189   :  { %1986 = vmatpush3.bf16.msra.mxu1 %v1985_v53 }
 0x18a   :  { %1987 = vmatprep.subr.bf16.mxu1 %v2257_v0 }
 0x18b   :  { %2010 = vmatpush3.bf16.msra.mxu0 %v2009_v57  ;;  %v935_v57 = vld [vmem:[#allocation10 + $0x118] sm:$0xff] }
 0x18c   :  { %2011 = vmatprep.subr.bf16.mxu0 %v2257_v0 }
 0x18d   :  { %1989 = vmatpush3.bf16.msra.mxu1 %v1988_v60  ;;  %v937_v60 = vld [vmem:[#allocation10 + $0x128] sm:$0xff] }
 0x18e   :  { %1990 = vmatprep.subr.bf16.mxu1 %v2257_v0  ;;  %v2030_v62 = vpack.c.bf16 %v937_v60, %v936_v59 }
 0x18f   :  { %2013 = vmatpush3.bf16.msra.mxu0 %v2012_v63  ;;  %v938_v63 = vld [vmem:[#allocation10 + $0x130] sm:$0xff] }
 0x190   :  { %2014 = vmatprep.subr.bf16.mxu0 %v2257_v0 }
 0x191   :  { %1992 = vmatpush3.bf16.msra.mxu1 %v1991_v4  ;;  %v2033_v4 = vpack.c.bf16 %v939_v2, %v938_v63 }
 0x192   :  { %1993 = vmatprep.subr.bf16.mxu1 %v2257_v0 }
 0x193   :  { %2016 = vmatpush3.bf16.msra.mxu0 %v2015_v7 }
 0x194   :  { %2017 = vmatprep.subr.bf16.mxu0 %v2257_v0 }
 0x195   :  { %1995 = vmatpush3.bf16.msra.mxu1 %v1994_v10  ;;  %v943_v10 = vld [vmem:[#allocation10 + $0x158] sm:$0xff] }
 0x196   :  { %1996 = vmatprep.subr.bf16.mxu1 %v2257_v0  ;;  %v2039_v14 = vpack.c.bf16 %v943_v10, %v942_v9 }
 0x197   :  { %2019 = vmatpush3.bf16.msra.mxu0 %v2018_v15  ;;  %v944_v15 = vld [vmem:[#allocation10 + $0x160] sm:$0xff] }
 0x198   :  { %2020 = vmatprep.subr.bf16.mxu0 %v2257_v0  ;;  %v2042_v17 = vpack.c.bf16 %v945_v16, %v944_v15 }
 0x199   :  { %1998 = vmatpush3.bf16.msra.mxu1 %v1997_v19  ;;  %v947_v19 = vld [vmem:[#allocation10 + $0x178] sm:$0xff] }
 0x19a   :  { %2023 = vmatprep.subr.bf16.mxu1 %v2257_v0  ;;  %v2045_v20 = vpack.c.bf16 %v947_v19, %v946_v18 }
 0x19b   :  { %2022 = vmatpush3.bf16.msra.mxu0 %v2021_v21  ;;  %v1118_v21 = vld [vmem:[#allocation12] sm:$0xff] }
 0x19c   :  { %2047 = vmatprep.subr.bf16.mxu0 %v2257_v0 }
 0x24f   :  { %v595_v22 = vpop.f32.mrb[10].mxu1 }
 0x250   :  { %v600_v23 = vmul.f32 0.001953125, %v595_v22  ;;  %v1644_v24 = vpop.f32.mrb[11].mxu1  ;;  %v1119_v22 = vld [vmem:[#allocation12 + $0x8] sm:$0xff] }
 0x251   :  { %v667_v25 = vpop.f32.mrb[20].mxu0  ;;  %v1120_v24 = vld [vmem:[#allocation12 + $0x10] sm:$0xff] }
 0x252   :  { %v672_v26 = vmul.f32 %v600_v23, %v600_v23  ;;  %v671_v27 = vmul.f32 0.001953125, %v667_v25  ;;  %v1679_v28 = vpop.f32.mrb[21].mxu0  ;;  %v1121_v25 = vld [vmem:[#allocation12 + $0x18] sm:$0xff] }
 0x253   :  { %v1123_v28 = vld [vmem:[#allocation12 + $0x28] sm:$0xff] }
 0x254   :  { %v673_v29 = vsub.f32 %v671_v27, %v672_v26  ;;  %v2051_v26 = vpack.c.bf16 %v1121_v25, %v1120_v24  ;;  %v1122_v27 = vld [vmem:[#allocation12 + $0x20] sm:$0xff] }
 0x256   :  { %v675_v30 = vadd.f32 1e-05, %v673_v29  ;;  %v1124_v29 = vld [vmem:[#allocation12 + $0x30] sm:$0xff] }
 0x258   :  { %2106 = vrsqrt.f32 %v675_v30  ;;  %v1125_v30 = vld [vmem:[#allocation12 + $0x38] sm:$0xff] }
 0x259   :  { %v2057_v31 = vpack.c.bf16 %v1125_v30, %v1124_v29 }
 0x262   :  { %v2107_v35 = vpop.eup %2106 }
 0x263   :  { %v677_v36 = vmul.f32 %v2107_v35, %v674_v33  ;;  %v1127_v33 = vld [vmem:[#allocation12 + $0x48] sm:$0xff] }
 0x264   :  { %v2060_v35 = vpack.c.bf16 %v1127_v33, %v1126_v32 }
 0x265   :  { %v679_v38 = vmul.f32 %v677_v36, %v600_v23  ;;  %v685_v39 = vrot.slane %v677_v36, %v2544_v34  ;;  %v2048_v23 = vpack.c.bf16 %v1119_v22, %v1118_v21  ;;  %v1128_v36 = vld [vmem:[#allocation12 + $0x50] sm:$0xff] }
 0x267   :  { %v680_v40 = vsub.f32 %v678_v37, %v679_v38  ;;  %v687_v41 = vmul.f32 %v685_v39, %v2496_v50  ;;  %v688_v42 = vmul.f32 %v685_v39, %v2499_v55  ;;  %v689_v43 = vmul.f32 %v685_v39, %v2510_v11  ;;  %v932_v50 = vld [vmem:[#allocation10 + $0x100] sm:$0xff]  ;;  %v933_v55 = vld [vmem:[#allocation10 + $0x108] sm:$0xff]  ;;  %v934_v11 = vld [vmem:[#allocation10 + $0x110] sm:$0xff] }
 0x268   :  { %v690_v44 = vmul.f32 %v685_v39, %v2513_v12  ;;  %v2024_v56 = vpack.c.bf16 %v933_v55, %v932_v50  ;;  %v2027_v58 = vpack.c.bf16 %v935_v57, %v934_v11  ;;  %v1129_v37 = vld [vmem:[#allocation12 + $0x58] sm:$0xff]  ;;  %v1130_v39 = vld [vmem:[#allocation12 + $0x60] sm:$0xff] }
 0x269   :  { %v695_v45 = vrot.slane %v680_v40, %v2544_v34  ;;  %v2063_v38 = vpack.c.bf16 %v1129_v37, %v1128_v36  ;;  %v1131_v40 = vld [vmem:[#allocation12 + $0x68] sm:$0xff] }
 0x26b   :  { %v697_v46 = vadd.f32 %v695_v45, %v687_v41  ;;  %v698_v47 = vadd.f32 %v695_v45, %v688_v42  ;;  %v699_v48 = vadd.f32 %v695_v45, %v689_v43  ;;  %v700_v49 = vadd.f32 %v695_v45, %v690_v44  ;;  %v1132_v42 = vld [vmem:[#allocation12 + $0x70] sm:$0xff]  ;;  %v1133_v43 = vld [vmem:[#allocation12 + $0x78] sm:$0xff] }
 0x26c   :  { %v2066_v41 = vpack.c.bf16 %v1131_v40, %v1130_v39  ;;  %v2069_v44 = vpack.c.bf16 %v1133_v43, %v1132_v42 }
 0x26d   :  { %v701_v51 = vmax.f32 %v697_v46, 0.0  ;;  %v702_v52 = vmax.f32 %v698_v47, 0.0  ;;  %v703_v53 = vmax.f32 %v699_v48, 0.0  ;;  %v704_v54 = vmax.f32 %v700_v49, 0.0 }
 0x26f   :  { %707 = vst [vmem:[#allocation3 + $0x1] sm:$0xff] %v701_v51  ;;  %708 = vst [vmem:[#allocation3 + $0x9] sm:$0xff] %v702_v52 }
 0x270   :  { %711 = vst [vmem:[#allocation3 + $0x13] sm:$0xff] %v703_v53  ;;  %712 = vst [vmem:[#allocation3 + $0x1b] sm:$0xff] %v704_v54 }
 0x276   :  { %v713_v12 = vld [vmem:[#allocation3] sm:$0xff]  ;;  %v714_v61 = vld [vmem:[#allocation3 + $0x8] sm:$0xff] }
 0x277   :  { %1713 = vmatmul.mubr.f32.vlgmr.msra.gmra.mrb[12].mxu1 %v713_v12  ;;  %1760 = vmatmul.mubr.f32.vlgmr.msra.gmra.mrb[22].mxu0 %v713_v12  ;;  %v715_v3 = vld [vmem:[#allocation3 + $0x10] sm:$0xff]  ;;  %v716_v7 = vld [vmem:[#allocation3 + $0x18] sm:$0xff]  ;;  %v717_v13 = vld [vmem:[#allocation3 + $0x20] sm:$0xf] }
 0x278   :  { %2025 = vmatpush3.bf16.msra.mxu1 %v2024_v56  ;;  %1715 = vmatprep.mubr.msk.f32.mxu1 %vm2259_vm1, %v2258_v1 }
 0x279   :  { %1762 = vmatprep.mubr.msk.f32.mxu0 %vm2259_vm1, %v2258_v1  ;;  %2026 = vmatprep.subr.bf16.mxu1 %v2257_v0 }
 0x27a   :  { %2049 = vmatpush3.bf16.msra.mxu0 %v2048_v23 }
 0x27b   :  { %1716 = vmatmul.mubr.f32.gmra.mrb[14].mxu1 %v714_v61  ;;  %1763 = vmatmul.mubr.f32.gmra.mrb[24].mxu0 %v714_v61 }
 0x27c   :  { %2028 = vmatpush3.bf16.msra.mxu1 %v2027_v58  ;;  %1718 = vmatprep.mubr.msk.f32.mxu1 %vm2259_vm1, %v2258_v1 }
 0x27d   :  { %1765 = vmatprep.mubr.msk.f32.mxu0 %vm2259_vm1, %v2258_v1  ;;  %2029 = vmatprep.subr.bf16.mxu1 %v2257_v0 }
 0x27e   :  { %2050 = vmatprep.subr.bf16.mxu0 %v2257_v0 }
 0x27f   :  { %1719 = vmatmul.mubr.f32.gmra.mrb[16].mxu1 %v715_v3  ;;  %1766 = vmatmul.mubr.f32.gmra.mrb[26].mxu0 %v715_v3 }
 0x280   :  { %2031 = vmatpush3.bf16.msra.mxu1 %v2030_v62  ;;  %1721 = vmatprep.mubr.msk.f32.mxu1 %vm2259_vm1, %v2258_v1 }
 0x281   :  { %1768 = vmatprep.mubr.msk.f32.mxu0 %vm2259_vm1, %v2258_v1  ;;  %2032 = vmatprep.subr.bf16.mxu1 %v2257_v0 }
 0x282   :  { %2052 = vmatpush3.bf16.msra.mxu0 %v2051_v26 }
 0x283   :  { %1722 = vmatmul.mubr.f32.gmra.mrb[18].mxu1 %v716_v7  ;;  %1769 = vmatmul.mubr.f32.gmra.mrb[28].mxu0 %v716_v7 }
 0x284   :  { %2034 = vmatpush3.bf16.msra.mxu1 %v2033_v4  ;;  %1724 = vmatprep.mubr.msk.f32.mxu1 %vm2259_vm1, %v2258_v1 }
 0x285   :  { %1771 = vmatprep.mubr.msk.f32.mxu0 %vm2259_vm1, %v2258_v1  ;;  %2035 = vmatprep.subr.bf16.mxu1 %v2257_v0 }
 0x286   :  { %2053 = vmatprep.subr.bf16.mxu0 %v2257_v0 }
 0x287   :  { %1725 = vmatmul.mubr.f32.gmra.mrb[20].mxu1 %v717_v13  ;;  %1772 = vmatmul.mubr.f32.gmra.mrb[30].mxu0 %v717_v13 }
 0x288   :  { %2037 = vmatpush3.bf16.msra.mxu1 %v2036_v8  ;;  %1806 = vmatprep.mubr.msk.f32.mxu1 %vm2259_vm1, %v2258_v1 }
 0x289   :  { %2038 = vmatprep.subr.bf16.mxu1 %v2257_v0  ;;  %1853 = vmatprep.mubr.msk.f32.mxu0 %vm2259_vm1, %v2258_v1 }
 0x28c   :  { %2040 = vmatpush3.bf16.msra.mxu1 %v2039_v14 }
 0x28d   :  { %2041 = vmatprep.subr.bf16.mxu1 %v2257_v0 }
 0x290   :  { %2043 = vmatpush3.bf16.msra.mxu1 %v2042_v17 }
 0x291   :  { %2044 = vmatprep.subr.bf16.mxu1 %v2257_v0 }
 0x294   :  { %2046 = vmatpush3.bf16.msra.mxu1 %v2045_v20 }
 0x295   :  { %2071 = vmatprep.subr.bf16.mxu1 %v2257_v0 }
 0x297   :  { %1807 = vmatmul.mubr.f32.vlgmr.msra.gmra.mrb[22].mxu1 %v713_v12 }
 0x298   :  { %1809 = vmatprep.mubr.msk.f32.mxu1 %vm2259_vm1, %v2258_v1  ;;  %2073 = vmatpush3.bf16.msra.mxu1 %v2048_v23 }
 0x299   :  { %2074 = vmatprep.subr.bf16.mxu1 %v2257_v0 }
 0x29b   :  { %1810 = vmatmul.mubr.f32.gmra.mrb[24].mxu1 %v714_v61 }
 0x29c   :  { %1812 = vmatprep.mubr.msk.f32.mxu1 %vm2259_vm1, %v2258_v1  ;;  %2076 = vmatpush3.bf16.msra.mxu1 %v2051_v26 }
 0x29d   :  { %2077 = vmatprep.subr.bf16.mxu1 %v2257_v0 }
 0x29f   :  { %1813 = vmatmul.mubr.f32.gmra.mrb[26].mxu1 %v715_v3 }
 0x2a0   :  { %1815 = vmatprep.mubr.msk.f32.mxu1 %vm2259_vm1, %v2258_v1 }
 0x2a3   :  { %1816 = vmatmul.mubr.f32.gmra.mrb[28].mxu1 %v716_v7 }
 0x2a4   :  { %1818 = vmatprep.mubr.msk.f32.mxu1 %vm2259_vm1, %v2258_v1 }
 0x2a7   :  { %1819 = vmatmul.mubr.f32.gmra.mrb[30].mxu1 %v717_v13 }
 0x2a8   :  { %1888 = vmatprep.mubr.msk.f32.mxu1 %vm2259_vm1, %v2258_v1  ;;  %v2054_v1 = vpack.c.bf16 %v1123_v28, %v1122_v27 }
 0x2aa   :  { %2055 = vmatpush3.bf16.msra.mxu0 %v2054_v1  ;;  %2079 = vmatpush3.bf16.msra.mxu1 %v2054_v1 }
 0x2ab   :  { %2056 = vmatprep.subr.bf16.mxu0 %v2257_v0  ;;  %2080 = vmatprep.subr.bf16.mxu1 %v2257_v0 }
 0x2ae   :  { %2058 = vmatpush3.bf16.msra.mxu0 %v2057_v31  ;;  %2082 = vmatpush3.bf16.msra.mxu1 %v2057_v31 }
 0x2af   :  { %2059 = vmatprep.subr.bf16.mxu0 %v2257_v0  ;;  %2083 = vmatprep.subr.bf16.mxu1 %v2257_v0 }
 0x2b2   :  { %2061 = vmatpush3.bf16.msra.mxu0 %v2060_v35  ;;  %2085 = vmatpush3.bf16.msra.mxu1 %v2060_v35 }
 0x2b3   :  { %2062 = vmatprep.subr.bf16.mxu0 %v2257_v0  ;;  %2086 = vmatprep.subr.bf16.mxu1 %v2257_v0 }
 0x2b6   :  { %2064 = vmatpush3.bf16.msra.mxu0 %v2063_v38  ;;  %2088 = vmatpush3.bf16.msra.mxu1 %v2063_v38 }
 0x2b7   :  { %2065 = vmatprep.subr.bf16.mxu0 %v2257_v0  ;;  %2089 = vmatprep.subr.bf16.mxu1 %v2257_v0 }
 0x2ba   :  { %2067 = vmatpush3.bf16.msra.mxu0 %v2066_v41  ;;  %2091 = vmatpush3.bf16.msra.mxu1 %v2066_v41 }
 0x2bb   :  { %2068 = vmatprep.subr.bf16.mxu0 %v2257_v0  ;;  %2092 = vmatprep.subr.bf16.mxu1 %v2257_v0 }
 0x2be   :  { %2070 = vmatpush3.bf16.msra.mxu0 %v2069_v44  ;;  %2094 = vmatpush3.bf16.msra.mxu1 %v2069_v44 }
 0x34a   :  { %v800_v45 = vpop.f32.mrb[12].mxu1  ;;  %v907_v46 = vpop.f32.mrb[22].mxu0 }
 0x34b   :  { %v1714_v47 = vpop.f32.mrb[13].mxu1  ;;  %v1761_v48 = vpop.f32.mrb[23].mxu0  ;;  %v1041_v52 = vrot.slane %v907_v46, 1 }
 0x34e   :  { %v805_v49 = vpop.f32.mrb[14].mxu1  ;;  %v912_v51 = vpop.f32.mrb[24].mxu0 }
 0x34f   :  { %v1042_v53 = vrot.slane %v912_v51, 1  ;;  %v1717_v54 = vpop.f32.mrb[15].mxu1  ;;  %v1764_v50 = vpop.f32.mrb[25].mxu0 }
 0x351   :  { %v1043_v55 = vsel %vm434_vm3, %v1041_v52, %v1042_v53 }
 0x352   :  { %v1048_v56 = vadd.f32 %v1043_v55, %v800_v45  ;;  %v810_v11 = vpop.f32.mrb[16].mxu1  ;;  %v917_v57 = vpop.f32.mrb[26].mxu0 }
 0x353   :  { %v1044_v12 = vrot.slane %v917_v57, 1  ;;  %v1720_v0 = vpop.f32.mrb[17].mxu1  ;;  %v1767_v58 = vpop.f32.mrb[27].mxu0 }
 0x355   :  { %v1045_v59 = vsel %vm434_vm3, %v1042_v53, %v1044_v12 }
 0x356   :  { %v1049_v60 = vadd.f32 %v1045_v59, %v805_v49  ;;  %v815_v61 = vpop.f32.mrb[18].mxu1  ;;  %v922_v62 = vpop.f32.mrb[28].mxu0 }
 0x357   :  { %v1064_v63 = vrot.slane %v922_v62, 1  ;;  %v1723_v2 = vpop.f32.mrb[19].mxu1  ;;  %v1770_v3 = vpop.f32.mrb[29].mxu0 }
 0x359   :  { %v1065_v4 = vsel %vm434_vm3, %v1044_v12, %v1064_v63 }
 0x35a   :  { %v1071_v5 = vadd.f32 %v1065_v4, %v810_v11  ;;  %v820_v6 = vpop.f32.mrb[20].mxu1  ;;  %v927_v7 = vpop.f32.mrb[30].mxu0 }
 0x35b   :  { %v1066_v8 = vrot.slane %v927_v7, 1  ;;  %v1726_v9 = vpop.f32.mrb[21].mxu1  ;;  %v1773_v10 = vpop.f32.mrb[31].mxu0 }
 0x35d   :  { %v1067_v13 = vsel %vm434_vm3, %v1064_v63, %v1066_v8  ;;  %v1073_v14 = vadd.f32 %v1066_v8, %v820_v6 }
 0x35e   :  { %v1072_v15 = vadd.f32 %v1067_v13, %v815_v61  ;;  %v1278_v13 = vld [vmem:[%s2653_s7] sm:$0x1]  ;;  %s2220_s7 = scalar_lea.vmem %s1319_s1, 512 }
 0x35f   :  { %p2221_p12 = scmp.ne.s32.totalorder %s1319_s1, %s2220_s7  ;;  %p2226_p0 = scmp.lt.s32.totalorder %s2220_s7, %s2220_s7 }
 0x361   :  { %p2227_p1 = por %p2226_p0, %p2225_p13 }
 0x363   :  { %p2228_p2 = pnand %p2227_p1, %p2221_p12 }
 0x36a   :  { %v1014_v16 = vpop.f32.mrb[22].mxu1 }
 0x36b   :  { %v1808_v17 = vpop.f32.mrb[23].mxu1  ;;  %v1053_v19 = vrot.slane %v1014_v16, 2  ;;  %v1282_v16 = vld [vmem:[%s2654_s8] sm:$0x1] }
 0x36e   :  { %v1019_v18 = vpop.f32.mrb[24].mxu1 }
 0x36f   :  { %v1054_v20 = vrot.slane %v1019_v18, 2  ;;  %v1811_v21 = vpop.f32.mrb[25].mxu1 }
 0x371   :  { %v1055_v22 = vsel %vm447_vm4, %v1053_v19, %v1054_v20 }
 0x372   :  { %v2612_v23 = vadd.f32 %v1055_v22, %v1048_v56  ;;  %v1024_v24 = vpop.f32.mrb[26].mxu1 }
 0x373   :  { %v1056_v25 = vrot.slane %v1024_v24, 2  ;;  %v1814_v26 = vpop.f32.mrb[27].mxu1 }
 0x374   :  { %v1105_v44 = vmul.f32 %v2612_v23, %v2612_v23 }
 0x375   :  { %v1057_v27 = vsel %vm447_vm4, %v1054_v20, %v1056_v25 }
 0x376   :  { %v1061_v28 = vadd.f32 %v1057_v27, %v1049_v60  ;;  %v1029_v1 = vpop.f32.mrb[28].mxu1 }
 0x377   :  { %v1076_v29 = vrot.slane %v1029_v1, 2  ;;  %v1817_v30 = vpop.f32.mrb[29].mxu1 }
 0x378   :  { %v1106_v40 = vmul.f32 %v1061_v28, %v1061_v28  ;;  %v1096_v45 = vadd.f32 %v1061_v28, %v2612_v23 }
 0x379   :  { %v1077_v31 = vsel %vm447_vm4, %v1056_v25, %v1076_v29 }
 0x37a   :  { %v1083_v32 = vadd.f32 %v1077_v31, %v1071_v5  ;;  %v1034_v33 = vpop.f32.mrb[30].mxu1  ;;  %v1109_v48 = vadd.f32 %v1106_v40, %v1105_v44 }
 0x37b   :  { %v1078_v35 = vrot.slane %v1034_v33, 2  ;;  %v1820_v36 = vpop.f32.mrb[31].mxu1 }
 0x37c   :  { %v1089_v42 = vrot.slane %v1083_v32, 2 }
 0x37d   :  { %v1079_v37 = vsel %vm447_vm4, %v1076_v29, %v1078_v35  ;;  %v1085_v38 = vadd.f32 %v1078_v35, %v1073_v14 }
 0x37e   :  { %v1084_v39 = vadd.f32 %v1079_v37, %v1072_v15 }
 0x37f   :  { %v1092_v41 = vrot.slane %v1085_v38, 2 }
 0x380   :  { %v1090_v43 = vrot.slane %v1084_v39, 2 }
 0x382   :  { %v1091_v46 = vsel %vm447_vm4, %v1089_v42, %v1090_v43  ;;  %v1093_v47 = vsel %vm447_vm4, %v1090_v43, %v1092_v41 }
 0x383   :  { %v1097_v49 = vadd.f32 %v1096_v45, %v1091_v46  ;;  %v1107_v51 = vmul.f32 %v1091_v46, %v1091_v46  ;;  %v1108_v53 = vmul.f32 %v1093_v47, %v1093_v47 }
 0x385   :  { %v1098_v52 = vadd.f32 %v1097_v49, %v1093_v47  ;;  %v1110_v54 = vadd.f32 %v1109_v48, %v1107_v51 }
 0x387   :  { %v1099_v50 = vrot.slane %v1098_v52, 4  ;;  %v1111_v55 = vadd.f32 %v1110_v54, %v1108_v53 }
 0x389   :  { %v1100_v56 = vadd.f32 %v1099_v50, %v1098_v52  ;;  %v1112_v11 = vrot.slane %v1111_v55, 4 }
 0x38b   :  { %v1101_v57 = vrot.slane %v1100_v56, 2  ;;  %v1113_v12 = vadd.f32 %v1112_v11, %v1111_v55 }
 0x38d   :  { %v1102_v0 = vadd.f32 %v1101_v57, %v1100_v56  ;;  %v1114_v58 = vrot.slane %v1113_v12, 2 }
 0x38f   :  { %v1103_v59 = vrot.slane %v1102_v0, 1  ;;  %v1115_v60 = vadd.f32 %v1114_v58, %v1113_v12 }
 0x391   :  { %v1104_v61 = vadd.f32 %v1103_v59, %v1102_v0  ;;  %v1116_v62 = vrot.slane %v1115_v60, 1 }
 0x393   :  { %1854 = vmatmul.mubr.f32.vlgmr.msra.gmra.mrb[32].mxu0 %v1104_v61  ;;  %v1117_v63 = vadd.f32 %v1116_v62, %v1115_v60 }
 0x395   :  { %1889 = vmatmul.mubr.f32.vlgmr.msra.gmra.mrb[32].mxu1 %v1117_v63 }
 0x466   :  { %v1200_v2 = vpop.f32.mrb[32].mxu0 }
 0x467   :  { %v1204_v3 = vmul.f32 0.001953125, %v1200_v2  ;;  %v1855_v4 = vpop.f32.mrb[33].mxu0 }
 0x468   :  { %v1271_v5 = vpop.f32.mrb[32].mxu1 }
 0x469   :  { %v1276_v6 = vmul.f32 %v1204_v3, %v1204_v3  ;;  %v1275_v7 = vmul.f32 0.001953125, %v1271_v5  ;;  %v1890_v8 = vpop.f32.mrb[33].mxu1 }
 0x46b   :  { %v1277_v9 = vsub.f32 %v1275_v7, %v1276_v6 }
 0x46d   :  { %v1279_v10 = vadd.f32 1e-05, %v1277_v9 }
 0x46f   :  { %2108 = vrsqrt.f32 %v1279_v10 }
 0x479   :  { %v2109_v14 = vpop.eup %2108 }
 0x47a   :  { %v1281_v15 = vmul.f32 %v2109_v14, %v1278_v13 }
 0x47c   :  { %v1283_v17 = vmul.f32 %v1281_v15, %v1204_v3  ;;  %v1289_v18 = vrot.slane %v1281_v15, %v2544_v34 }
 0x47e   :  { %v1284_v19 = vsub.f32 %v1282_v16, %v1283_v17  ;;  %v1291_v20 = vmul.f32 %v1289_v18, %v2612_v23  ;;  %v1292_v21 = vmul.f32 %v1289_v18, %v1061_v28  ;;  %v1293_v22 = vmul.f32 %v1289_v18, %v1091_v46 }
 0x47f   :  { %v1294_v24 = vmul.f32 %v1289_v18, %v1093_v47 }
 0x480   :  { %v1299_v25 = vrot.slane %v1284_v19, %v2544_v34 }
 0x482   :  { %v1301_v26 = vadd.f32 %v1299_v25, %v1291_v20  ;;  %v1302_v27 = vadd.f32 %v1299_v25, %v1292_v21  ;;  %v1303_v1 = vadd.f32 %v1299_v25, %v1293_v22  ;;  %v1304_v29 = vadd.f32 %v1299_v25, %v1294_v24 }
 0x484   :  { %v1305_v30 = vmax.f32 %v1301_v26, 0.0  ;;  %v1306_v31 = vmax.f32 %v1302_v27, 0.0  ;;  %v1307_v32 = vmax.f32 %v1303_v1, 0.0  ;;  %v1308_v33 = vmax.f32 %v1304_v29, 0.0 }
 0x486   :  { %1309 = vst [vmem:[#allocation13] sm:$0xff] %v1305_v30  ;;  %1310 = vst [vmem:[#allocation13 + $0x8] sm:$0xff] %v1306_v31 }
 0x487   :  { %1311 = vst [vmem:[#allocation13 + $0x10] sm:$0xff] %v1307_v32  ;;  %1312 = vst [vmem:[#allocation13 + $0x18] sm:$0xff] %v1308_v33 }
 0x488   :  { %2231 = shalt.err (!%p2228_p2)
}
 0x489   :  { %s2232_s14 = scalar_lea.hbm %s2655_s9, 512 }
 0x48a   :  { %p2233_p3 = scmp.ne.s32.totalorder %s2655_s9, %s2232_s14  ;;  %p2236_p4 = scmp.lt.u32.totalorder %s2232_s14, %s2655_s9 }
 0x48c   :  { %p2238_p5 = pnand %p2236_p4, %p2233_p3 }
 0x48e   :  { %2241 = shalt.err (!%p2238_p5)
}
 0x48f   :  { %1324 = dma.vmem_to_hbm [thread:$0]  %s1319_s1, 512, %s2655_s9, [#allocation6], %s2252_s21, %s2252_s21, %s2253_s22  }
 0x490   :  { %2248 = dma.done.wait [#allocation6], 512  }
 0x491   :  { %2249 = vsyncadd [#allocation6], 4294966784 }
 0x492   :  { %1328 = vsyncpa [#allocation5], 1 }
 0x493   :  { %1329 = vsyncpa [#allocation8], 1 }
 0x494   :  { %1330 = vsyncpa [#allocation11], 1 }
 0x495   :  { %1331 = vsyncpa [#allocation6], 1 }

</bundles_post_ra>
